<compile_context>
chip_gen: v7x
topology: tpu7x:2x2x1
jax: 0.10.0
libtpu: 0.0.40
codegen_flags: <defaults>
</compile_context>

<pallas_src>
import jax
import jax.numpy as jnp
from jax import lax
from jax.experimental import pallas as pl
from jax.experimental.pallas import tpu as pltpu


# ---------------- fused Pallas kernel ----------------

def fused_retriever_kernel(inv_ref, ids_ref, mask_ref, t_ref, o_ref):
    # inv_ref : (B,)  f32 SMEM (scalar prefetch) - clamped reciprocal of mask counts
    # ids_ref : (1, 1, TS, 1) int32   token ids for (batch b, seq tile s), column layout
    # mask_ref: (1, 1, 1, TS) float32 attention mask for (b, s), lane-dense row
    # t_ref   : (V, H) bfloat16       folded table T = emb @ W + b (VMEM resident)
    # o_ref   : (1, 1, H) float32     pooled output for batch b (resident accumulator)
    b = pl.program_id(0)
    s = pl.program_id(1)

    ts = ids_ref.shape[2]
    vocab = t_ref.shape[0]

    ids_col = ids_ref[...].reshape(ts, 1)        # (TS, 1) int32
    mask_row = mask_ref[...].reshape(1, ts)      # (1, TS) f32

    # Embedding(+dense) gather as an exact one-hot matmul on the MXU.
    # Canonical orientation: (TS, V) @ (V, H) with contraction on lhs dim 1.
    onehot = (lax.broadcasted_iota(jnp.int32, (ts, vocab), 1) == ids_col).astype(jnp.bfloat16)
    x = jnp.dot(onehot, t_ref[...], preferred_element_type=jnp.float32)   # (TS, H) == T[ids]

    # tanh on the EUP in f32 (v5e has no bf16 EUP; f32 everywhere after the MXU).
    h = jnp.tanh(x)                                                        # (TS, H) f32

    # Masked sum over the seq tile on the MXU: (1, TS) @ (TS, H) -> (1, H).
    tile_sum = jnp.dot(mask_row, h, preferred_element_type=jnp.float32)

    @pl.when(s == 0)
    def _init():
        o_ref[...] = jnp.zeros_like(o_ref)

    o_ref[...] += tile_sum.reshape(o_ref.shape)

    @pl.when(s == pl.num_programs(1) - 1)
    def _finalize():
        # pooled mean: multiply by precomputed 1 / max(count, 1e-9) (torch.clamp semantics)
        o_ref[...] *= inv_ref[b]


# ---------------- wrapper ----------------

def retriever_infer_forward(input_ids, attention_mask, params, *, seq_tile=256):
    """Fused Pallas forward. Returns the pooled doc embedding ('doc_cls'), shape (B, H).

    seq_tile: 256 fills the 256-wide MXU on v6e/v7x; use 128 on v5e.
    """
    emb = params["emb"].astype(jnp.float32)
    w = params["w"].astype(jnp.float32)
    bias = params["b"].reshape(1, -1).astype(jnp.float32)

    B, S = input_ids.shape
    V, H = emb.shape

    # Fold the dense layer into the table: onehot @ (emb @ W + b) == (onehot @ emb) @ W + b
    # exactly, since each one-hot row sums to 1.  One-time XLA matmul; bf16 table halves
    # resident VMEM and doubles MXU throughput inside the kernel.
    table = (jnp.dot(emb, w, precision="highest") + bias).astype(jnp.bfloat16)   # (V, H)

    # Clamped reciprocal of per-row token counts, scalar-prefetched into SMEM and used
    # only in the kernel's finalize branch (no per-step XLU reduce, no count scratch).
    mask_f = attention_mask.astype(jnp.float32)
    inv_den = (1.0 / jnp.maximum(jnp.sum(mask_f, axis=1), 1e-9)).astype(jnp.float32)  # (B,)

    # Pad the sequence to a tile multiple; padded tokens get mask=0 so they do not
    # contribute to the pooled mean (padded id 0 gathers a valid row, masked out).
    s_pad = pl.cdiv(S, seq_tile) * seq_tile
    if s_pad != S:
        input_ids = jnp.pad(input_ids, ((0, 0), (0, s_pad - S)))
        mask_f = jnp.pad(mask_f, ((0, 0), (0, s_pad - S)))
    n_s = s_pad // seq_tile

    # ids in column layout (compare target for the (TS, V) one-hot), mask lane-dense row.
    ids4 = input_ids.astype(jnp.int32).reshape(B, n_s, seq_tile, 1)
    mask4 = mask_f.reshape(B, n_s, 1, seq_tile)

    grid_spec = pltpu.PrefetchScalarGridSpec(
        num_scalar_prefetch=1,                    # inv_den -> SMEM
        grid=(B, n_s),
        in_specs=[
            pl.BlockSpec((1, 1, seq_tile, 1), lambda b, s, inv: (b, s, 0, 0)),  # ids
            pl.BlockSpec((1, 1, 1, seq_tile), lambda b, s, inv: (b, s, 0, 0)),  # mask
            pl.BlockSpec((V, H), lambda b, s, inv: (0, 0)),                     # folded table (resident)
        ],
        out_specs=pl.BlockSpec((1, 1, H), lambda b, s, inv: (b, 0, 0)),
    )

    pooled = pl.pallas_call(
        fused_retriever_kernel,
        out_shape=jax.ShapeDtypeStruct((B, 1, H), jnp.float32),
        grid_spec=grid_spec,
        compiler_params=pltpu.CompilerParams(
            # batch across TensorCores (v7x megacore), seq tiles as the reduction axis
            dimension_semantics=("parallel", "arbitrary"),
        ),
    )(inv_den, ids4, mask4, table)

    return pooled.reshape(B, H)


# ---------------- reference (pure JAX) ----------------

def reference_forward(input_ids, attention_mask, params):
    x = jnp.take(params["emb"].astype(jnp.float32), input_ids, axis=0)      # (B, S, H)
    h = jnp.tanh(jnp.matmul(x, params["w"].astype(jnp.float32), precision="highest")
                 + params["b"].reshape(1, 1, -1))
    m = attention_mask.astype(jnp.float32)[..., None]                        # (B, S, 1)
    num = jnp.sum(h * m, axis=1)                                             # (B, H)
    den = jnp.maximum(jnp.sum(m, axis=1), 1e-9)                              # (B, 1)
    return num / den


if __name__ == "__main__":
    # Small but TPU-layout-friendly shapes (multiples of 128 on lane dims).
    B, S, H, VOCAB = 4, 256, 256, 1024

    key = jax.random.PRNGKey(0)
    k_emb, k_w, k_b, k_ids = jax.random.split(key, 4)

    params = {
        "emb": jax.random.normal(k_emb, (VOCAB, H), dtype=jnp.float32) * 0.02,
        "w": jax.random.normal(k_w, (H, H), dtype=jnp.float32) * 0.05,
        "b": jax.random.normal(k_b, (1, H), dtype=jnp.float32) * 0.01,
    }

    input_ids = jax.random.randint(k_ids, (B, S), 0, VOCAB, dtype=jnp.int32)
    # Variable-length sequences (first full, others progressively padded).
    lengths = jnp.array([S, S // 2, (3 * S) // 4, 1], dtype=jnp.int32)
    attention_mask = (jnp.arange(S)[None, :] < lengths[:, None]).astype(jnp.int32)

    out = retriever_infer_forward(input_ids, attention_mask, params)
    out = jax.block_until_ready(out)

    ref = reference_forward(input_ids, attention_mask, params)
    assert out.shape == (B, H)
    max_err = float(jnp.max(jnp.abs(out - ref)))
    assert jnp.allclose(out, ref, atol=2e-3, rtol=1e-2), f"mismatch vs reference (max abs err {max_err})"

    print("KERNEL_OK")
</pallas_src>

<mosaic_0001>
module attributes {stable_mosaic.version = 11 : i64} {
  func.func @fused_retriever_kernel(%arg0: i32, %arg1: i32, %arg2: memref<4xf32, #tpu.memory_space<smem>>, %arg3: memref<1x1x256x1xi32, #tpu.memory_space<vmem>>, %arg4: memref<1x1x1x256xf32, #tpu.memory_space<vmem>>, %arg5: memref<1024x256xbf16, #tpu.memory_space<vmem>>, %arg6: memref<1x1x256xf32, #tpu.memory_space<vmem>>) attributes {dimension_semantics = [#tpu.dimension_semantics<parallel>, #tpu.dimension_semantics<arbitrary>], iteration_bounds = array<i64: 4, 1>, scalar_prefetch = 1 : i64, scratch_operands = 0 : i64, tpu.core_type = #tpu.core_type<tc>, window_params = [{transform_indices = @transform_0, window_bounds = array<i64: 1, 1, 256, 1>}, {transform_indices = @transform_1, window_bounds = array<i64: 1, 1, 1, 256>}, {pipeline_mode = #tpu.pipeline_mode<synchronous>, transform_indices = @transform_2, window_bounds = array<i64: 1024, 256>}, {transform_indices = @transform_3, window_bounds = array<i64: 1, 1, 256>}]} {
    %c0 = arith.constant 0 : index
    %c0_0 = arith.constant 0 : index
    %c0_1 = arith.constant 0 : index
    %c0_2 = arith.constant 0 : index
    %0 = vector.load %arg3[%c0, %c0_0, %c0_1, %c0_2] : memref<1x1x256x1xi32, #tpu.memory_space<vmem>>, vector<1x1x256x1xi32>
    %1 = vector.shape_cast %0 : vector<1x1x256x1xi32> to vector<256x1xi32>
    %c0_3 = arith.constant 0 : index
    %c0_4 = arith.constant 0 : index
    %c0_5 = arith.constant 0 : index
    %c0_6 = arith.constant 0 : index
    %2 = vector.load %arg4[%c0_3, %c0_4, %c0_5, %c0_6] : memref<1x1x1x256xf32, #tpu.memory_space<vmem>>, vector<1x1x1x256xf32>
    %3 = vector.shape_cast %2 : vector<1x1x1x256xf32> to vector<1x256xf32>
    %4 = tpu.iota {dimensions = array<i32: 1>} : vector<256x1024xi32>
    %5 = vector.broadcast %1 : vector<256x1xi32> to vector<256x1024xi32>
    %6 = arith.cmpi eq, %4, %5 : vector<256x1024xi32>
    %7 = arith.extui %6 : vector<256x1024xi1> to vector<256x1024xi32>
    %8 = arith.sitofp %7 : vector<256x1024xi32> to vector<256x1024xf32>
    %9 = arith.truncf %8 : vector<256x1024xf32> to vector<256x1024xbf16>
    %c0_7 = arith.constant 0 : index
    %c0_8 = arith.constant 0 : index
    %10 = vector.load %arg5[%c0_7, %c0_8] : memref<1024x256xbf16, #tpu.memory_space<vmem>>, vector<1024x256xbf16>
    %cst = arith.constant dense<0.000000e+00> : vector<256x256xf32>
    %11 = tpu.matmul %9, %10, %cst {dimension_numbers = #tpu.dot_dimension_numbers<[1], [0], [0], [1], [0, 0, 1, 1], [], []>} : vector<256x1024xbf16>, vector<1024x256xbf16>, vector<256x256xf32> -> vector<256x256xf32>
    %12 = math.tanh %11 : vector<256x256xf32>
    %cst_9 = arith.constant dense<0.000000e+00> : vector<1x256xf32>
    %13 = tpu.matmul %3, %12, %cst_9 {dimension_numbers = #tpu.dot_dimension_numbers<[1], [0], [0], [1], [0, 0, 1, 1], [], []>} : vector<1x256xf32>, vector<256x256xf32>, vector<1x256xf32> -> vector<1x256xf32>
    %c0_i32 = arith.constant 0 : i32
    %14 = arith.cmpi eq, %arg1, %c0_i32 : i32
    %15 = arith.extui %14 : i1 to i32
    %c0_i32_10 = arith.constant 0 : i32
    %16 = arith.cmpi ne, %15, %c0_i32_10 : i32
    scf.if %16 {
      %cst_19 = arith.constant 0.000000e+00 : f32
      %24 = vector.broadcast %cst_19 : f32 to vector<1x1x256xf32>
      %c0_20 = arith.constant 0 : index
      %c0_21 = arith.constant 0 : index
      %c0_22 = arith.constant 0 : index
      %25 = vector.load %arg6[%c0_20, %c0_21, %c0_22] : memref<1x1x256xf32, #tpu.memory_space<vmem>>, vector<1x1x256xf32>
      tpu.vector_store %arg6[%c0_20, %c0_21, %c0_22], %24 {strides = array<i32>} : memref<1x1x256xf32, #tpu.memory_space<vmem>>, vector<1x1x256xf32>,
    } else {
    }
    %c0_11 = arith.constant 0 : index
    %c0_12 = arith.constant 0 : index
    %c0_13 = arith.constant 0 : index
    %17 = vector.load %arg6[%c0_11, %c0_12, %c0_13] : memref<1x1x256xf32, #tpu.memory_space<vmem>>, vector<1x1x256xf32>
    %18 = vector.shape_cast %13 : vector<1x256xf32> to vector<1x1x256xf32>
    %19 = arith.addf %17, %18 : vector<1x1x256xf32>
    %c0_14 = arith.constant 0 : index
    %c0_15 = arith.constant 0 : index
    %c0_16 = arith.constant 0 : index
    %20 = vector.load %arg6[%c0_14, %c0_15, %c0_16] : memref<1x1x256xf32, #tpu.memory_space<vmem>>, vector<1x1x256xf32>
    tpu.vector_store %arg6[%c0_14, %c0_15, %c0_16], %19 {strides = array<i32>} : memref<1x1x256xf32, #tpu.memory_space<vmem>>, vector<1x1x256xf32>,
    %c0_i32_17 = arith.constant 0 : i32
    %21 = arith.cmpi eq, %arg1, %c0_i32_17 : i32
    %22 = arith.extui %21 : i1 to i32
    %c0_i32_18 = arith.constant 0 : i32
    %23 = arith.cmpi ne, %22, %c0_i32_18 : i32
    scf.if %23 {
      %c0_19 = arith.constant 0 : index
      %c0_20 = arith.constant 0 : index
      %c0_21 = arith.constant 0 : index
      %24 = vector.load %arg6[%c0_19, %c0_20, %c0_21] : memref<1x1x256xf32, #tpu.memory_space<vmem>>, vector<1x1x256xf32>
      %25 = arith.index_cast %arg0 : i32 to index
      %26 = memref.load %arg2[%25] : memref<4xf32, #tpu.memory_space<smem>>
      %27 = vector.broadcast %26 : f32 to vector<1x1x256xf32>
      %28 = arith.mulf %24, %27 : vector<1x1x256xf32>
      %c0_22 = arith.constant 0 : index
      %c0_23 = arith.constant 0 : index
      %c0_24 = arith.constant 0 : index
      %29 = vector.load %arg6[%c0_22, %c0_23, %c0_24] : memref<1x1x256xf32, #tpu.memory_space<vmem>>, vector<1x1x256xf32>
      tpu.vector_store %arg6[%c0_22, %c0_23, %c0_24], %28 {strides = array<i32>} : memref<1x1x256xf32, #tpu.memory_space<vmem>>, vector<1x1x256xf32>,
    } else {
    }
    return
  }
  func.func @transform_0(%arg0: i32, %arg1: i32, %arg2: memref<4xf32, #tpu.memory_space<smem>>) -> (i32, i32, i32, i32) {
    %c0_i32 = arith.constant 0 : i32
    %c0_i32_0 = arith.constant 0 : i32
    %c0_i32_1 = arith.constant 0 : i32
    return %arg0, %arg1, %c0_i32, %c0_i32_0 : i32, i32, i32, i32
  }
  func.func @transform_1(%arg0: i32, %arg1: i32, %arg2: memref<4xf32, #tpu.memory_space<smem>>) -> (i32, i32, i32, i32) {
    %c0_i32 = arith.constant 0 : i32
    %c0_i32_0 = arith.constant 0 : i32
    %c0_i32_1 = arith.constant 0 : i32
    return %arg0, %arg1, %c0_i32, %c0_i32_0 : i32, i32, i32, i32
  }
  func.func @transform_2(%arg0: i32, %arg1: i32, %arg2: memref<4xf32, #tpu.memory_space<smem>>) -> (i32, i32) {
    %c0_i32 = arith.constant 0 : i32
    %c0_i32_0 = arith.constant 0 : i32
    %c0_i32_1 = arith.constant 0 : i32
    return %c0_i32, %c0_i32_0 : i32, i32
  }
  func.func @transform_3(%arg0: i32, %arg1: i32, %arg2: memref<4xf32, #tpu.memory_space<smem>>) -> (i32, i32, i32) {
    %c0_i32 = arith.constant 0 : i32
    %c0_i32_0 = arith.constant 0 : i32
    %c0_i32_1 = arith.constant 0 : i32
    return %arg0, %c0_i32, %c0_i32_0 : i32, i32, i32
  }
}

</mosaic_0001>

<bundles_post_ra>
// kernel: tpu_custom_call.1
= control target key start
LH: loop header
LB: loop body
LE: loop exit
PB: predicated region body
PF: predicated region fallthrough
CT: control target
= control target key end

     0   :  { %s6749_s0 = inlined_call_operand.vmem [shape: f32[4], index: 0, kind: input, shape index: {}]   ;;  %s6750_s1 = inlined_call_operand.vmem [shape: s32[4,1,256,1], index: 1, kind: input, shape index: {}]   ;;  %s6751_s2 = inlined_call_operand.vmem [shape: f32[4,1,1,256], index: 2, kind: input, shape index: {}]   ;;  %s6752_s3 = inlined_call_operand.vmem [shape: bf16[1024,256], index: 3, kind: input, shape index: {}]   ;;  %s6753_s4 = inlined_call_operand.hbm [shape: f32[4,1,256], index: 4, kind: output, shape index: {}]  }
   0x1   :  { %s9_s17 = sshll.u32 %s6749_s0, 4  ;;  %s10_s17 = int_to_ptr.vmem [resolvable:$true] %s9_s17 }
   0x2   :  { %s4398_s18 = scalar_lea.vmem %s10_s17, 16  ;;  %p4403_p1 = scmp.lt.s32.totalorder %s10_s17, %s10_s17 }
   0x3   :  { %p4399_p0 = scmp.ne.s32.totalorder %s10_s17, %s4398_s18  ;;  %p4404_p2 = scmp.lt.s32.totalorder %s4398_s18, %s4398_s18 }
   0x5   :  { %p4405_p3 = por %p4404_p2, %p4403_p1 }
   0x7   :  { %p4406_p4 = pnand %p4405_p3, %p4399_p0 }
   0x9   :  { %4409 = shalt.err (!%p4406_p4)  }
   0xa   :  { %s4492_s19 = smov [#allocation3]  }
   0xb   :  { %12 = dma.vmem_to_smem %s10_s17, 16, %s4492_s19, [#allocation2] }
   0xc   :  { %4462 = dma.done.wait [#allocation2], 16 }
   0xd   :  { %4463 = vsyncadd [#allocation2], 4294967280 }
   0xe   :  { %14 = sfence }
   0xf   :  { %15 = vsyncpa [#allocation5], 0 }
  0x10   :  { %17 = vsyncpa [#allocation5 + $0x1], 0  ;;  %s4526_s20 = smov 0   ;;  %s4528_s21 = smov 0  }
  0x11   :  { %s4530_s0 = smov 0   ;;  %s4532_s22 = smov 0  }
  0x12   :  { %s4534_s23 = smov 0   ;;  %s4536_s24 = smov 0  }
  0x13 LB: > { %s3104_s25 = sadd.s32 4294967295, %s4490_s24   ;;  %s3105_s26 = sadd.s32 4294967294, %s4490_s24   ;;  %s4490_s24 = sphi %s4536_s24, %s23_s24   ;;  %s4486_s23 = sphi %s4534_s23, %s7129_s23   ;;  %s4482_s22 = sphi %s4532_s22, %s7128_s22   ;;  %s4478_s0 = sphi %s4530_s0, %s7127_s0   ;;  %s4474_s21 = sphi %s4528_s21, %s7126_s21   ;;  %s4470_s20 = sphi %s4526_s20, %s7125_s20  }
  0x14   : > { %s35_s27 = sadd.s32 1, %s4486_s23  ;;  %s119_s28 = sadd.s32 1, %s4478_s0 }
  0x15   : > { %p37_p5 = scmp.ge.s32.totalorder %s35_s27, 4  ;;  %p129_p6 = scmp.ne.s32.totalorder %s4478_s0, %s4474_s21 }
  0x16   : > { %p130_p7 = scmp.eq.s32.totalorder %s3104_s25, 3  ;;  %p135_p8 = scmp.ne.s32.totalorder %s4474_s21, %s4470_s20 }
  0x17   : > { %s7131_s27 = smov (%p37_p5, %s35_s27), 0  ;;  %p136_p10 = scmp.eq.s32.totalorder %s3105_s26, 3 }
  0x18   : > { %p4566_p9 = por %p130_p7, %p129_p6  ;;  %s116_s30 = ssub.s32 %s4486_s23, %s7131_s27 }
  0x19   : > { %p3108_p11 = scmp.ge.s32.totalorder %s4490_s24, 1  ;;  %p117_p12 = scmp.eq.s32.totalorder %s116_s30, 0 }
  0x1a   : > { %p4573_p13 = por %p136_p10, %p135_p8  ;;  %p180_p0 = scmp.lt.s32.totalorder %s4490_s24, 5 }
  0x1b   : > { %s4579_s6 = scalar_select %p117_p12, %s4478_s0, %s119_s28  }
  0x1c   : > { %p181_p1 = pnand %p3108_p11, %p180_p0 }
  0x1e   : > { %184 = sbr.rel (%p181_p1) target bundleno = 930 (0x3a2), region = 32 }
  0x25   : > { %p216_p2 = scmp.lt.s32.totalorder %s4482_s22, 3  ;;  %v4078_v0 = vld [vmem:[%s6752_s3 + $0x4] ss:$8 sps:$4 sm:$0xff]   ;;  %v4493_v1 = vmov 0   ;;  %v4082_v3 = vld [vmem:[%s6752_s3] ss:$8 sps:$4 sm:$0xff]  }
  0x26   : > { %4077 = vset.pattern.permute.xlu1 %v4493_v1  ;;  %4076 = vset.pattern.permute.xlu0 %v4493_v1  ;;  %v4080_v2 = vld [vmem:[%s6752_s3 + $0x204] ss:$8 sps:$4 sm:$0xff]   ;;  %v4083_v4 = vld [vmem:[%s6752_s3 + $0x200] ss:$8 sps:$4 sm:$0xff]   ;;  %v4084_v5 = vld [vmem:[%s6752_s3 + $0x14] ss:$8 sps:$4 sm:$0xff]  }
  0x27   : > { %s4589_s11 = scalar_select %p216_p2, %s4482_s22, 3  ;;  %2035 = vmatprep.subr.bf16.mxu1 %v4078_v0  ;;  %2421 = vmatprep.subr.bf16.mxu0 %v4080_v2  ;;  %v4086_v6 = vld [vmem:[%s6752_s3 + $0x214] ss:$8 sps:$4 sm:$0xff]   ;;  %v4088_v7 = vld [vmem:[%s6752_s3 + $0x10] ss:$8 sps:$4 sm:$0xff]  }
  0x28   : > { %2036 = vmatpush1.bf16.msra.mxu1 %v4082_v3  ;;  %2422 = vmatpush1.bf16.msra.mxu0 %v4083_v4  ;;  %v4089_v8 = vld [vmem:[%s6752_s3 + $0x210] ss:$8 sps:$4 sm:$0xff]   ;;  %v4090_v17 = vld [vmem:[%s6752_s3 + $0x24] ss:$8 sps:$4 sm:$0xff]   ;;  %v4094_v21 = vld [vmem:[%s6752_s3 + $0x20] ss:$8 sps:$4 sm:$0xff]  }
  0x29   : > { %s3758_s18 = sshll.u32 %s4589_s11, 8  ;;  %2037 = vmatprep.subr.bf16.mxu1 %v4084_v5  ;;  %2423 = vmatprep.subr.bf16.mxu0 %v4086_v6  ;;  %v4092_v18 = vld [vmem:[%s6752_s3 + $0x224] ss:$8 sps:$4 sm:$0xff]   ;;  %v4095_v22 = vld [vmem:[%s6752_s3 + $0x220] ss:$8 sps:$4 sm:$0xff]   ;;  %s2991_s7 = sld [smem:[#allocation3 + %s4482_s22]] }
  0x2a   : > { %s4610_s8 = scalar_lea.vmem %s6750_s1, %s3758_s18  ;;  %v4096_v23 = vld [vmem:[%s6752_s3 + $0x34] ss:$8 sps:$4 sm:$0xff]   ;;  %v4100_v25 = vld [vmem:[%s6752_s3 + $0x30] ss:$8 sps:$4 sm:$0xff]   ;;  %v4102_v28 = vld [vmem:[%s6752_s3 + $0x44] ss:$8 sps:$4 sm:$0xff]  }
  0x2b   : > { %v235_v9 = vld [vmem:[%s4610_s8 + $0x10] sm:$0xff]  ;;  %v233_v10 = vld [vmem:[%s4610_s8] sm:$0xff]  ;;  %v236_v11 = vld [vmem:[%s4610_s8 + $0x18] sm:$0xff]  ;;  %s3112_s18 = sshll.u32 %s4589_s11, 1  ;;  %s213_s11 = sand.u32 1, %s4474_s21  }
  0x2c   : > { %282 = vperm.xlu1 %4077, %v235_v9   ;;  %276 = vperm.xlu0 %4076, %v233_v10   ;;  %v234_v12 = vld [vmem:[%s4610_s8 + $0x8] sm:$0xff]  ;;  %v237_v14 = vld [vmem:[%s4610_s8 + $0x20] sm:$0xff]  ;;  %v240_v15 = vld [vmem:[%s4610_s8 + $0x38] sm:$0xff]  ;;  %s232_s26 = scalar_lea.vmem %s6751_s2, %s3112_s18  ;;  %s3109_s28 = sshll.u32 %s213_s11, 1 }
  0x2d   : > { %2038 = vmatpush1.bf16.msra.mxu1 %v4088_v7  ;;  %2424 = vmatpush1.bf16.msra.mxu0 %v4089_v8  ;;  %v238_v13 = vld [vmem:[%s4610_s8 + $0x28] sm:$0xff]  ;;  %v239_v16 = vld [vmem:[%s4610_s8 + $0x30] sm:$0xff]  ;;  %v241_v20 = vld [vmem:[%s4610_s8 + $0x40] sm:$0xff]  ;;  %s215_s30 = scalar_lea.vmem [#allocation4], %s3109_s28  ;;  %s3759_s9 = sshll.u32 %s4482_s22, 5 }
  0x2e   : > { %v242_v19 = vld [vmem:[%s4610_s8 + $0x48] sm:$0xff]  ;;  %2039 = vmatprep.subr.bf16.mxu1 %v4090_v17  ;;  %2425 = vmatprep.subr.bf16.mxu0 %v4092_v18  ;;  %v4098_v24 = vld [vmem:[%s6752_s3 + $0x234] ss:$8 sps:$4 sm:$0xff]   ;;  %v4101_v26 = vld [vmem:[%s6752_s3 + $0x230] ss:$8 sps:$4 sm:$0xff]   ;;  %s3010_s10 = sshll.u32 %s215_s30, 4  ;;  %s6700_s14 = scalar_lea.hbm %s6753_s4, %s3759_s9  ;;  %s6702_s10 = int_to_ptr.vmem [resolvable:$true] %s3010_s10 }
  0x2f   : > { %v244_v27 = vld [vmem:[%s4610_s8 + $0x58] sm:$0xff]  ;;  %v243_v29 = vld [vmem:[%s4610_s8 + $0x50] sm:$0xff]  ;;  %v4104_v30 = vld [vmem:[%s6752_s3 + $0x244] ss:$8 sps:$4 sm:$0xff]   ;;  %s4410_s15 = scalar_lea.vmem %s6702_s10, 32  ;;  %s4497_s22 = smov [#allocation4]  }
  0x30   : > { %285 = vperm.xlu1 %4077, %v236_v11   ;;  %279 = vperm.xlu0 %4076, %v234_v12   ;;  %v4106_v31 = vld [vmem:[%s6752_s3 + $0x40] ss:$8 sps:$4 sm:$0xff]   ;;  %v4108_v33 = vld [vmem:[%s6752_s3 + $0x54] ss:$8 sps:$4 sm:$0xff]   ;;  %v4112_v37 = vld [vmem:[%s6752_s3 + $0x50] ss:$8 sps:$4 sm:$0xff]   ;;  %p4411_p3 = scmp.ne.s32.totalorder %s6702_s10, %s4410_s15 }
  0x31   : > { %2040 = vmatpush1.bf16.msra.mxu1 %v4094_v21  ;;  %2426 = vmatpush1.bf16.msra.mxu0 %v4095_v22  ;;  %v4107_v32 = vld [vmem:[%s6752_s3 + $0x240] ss:$8 sps:$4 sm:$0xff]   ;;  %v4110_v35 = vld [vmem:[%s6752_s3 + $0x254] ss:$8 sps:$4 sm:$0xff]   ;;  %v4113_v38 = vld [vmem:[%s6752_s3 + $0x250] ss:$8 sps:$4 sm:$0xff]  }
  0x32   : > { %2041 = vmatprep.subr.bf16.mxu1 %v4096_v23  ;;  %2427 = vmatprep.subr.bf16.mxu0 %v4098_v24  ;;  %v246_v34 = vld [vmem:[%s4610_s8 + $0x68] sm:$0xff]  ;;  %v245_v36 = vld [vmem:[%s4610_s8 + $0x60] sm:$0xff]  ;;  %v248_v41 = vld [vmem:[%s4610_s8 + $0x78] sm:$0xff]  ;;  %p4412_p4 = pnand %p4411_p3, %p4566_p9  ;;  %s4414_s16 = sshll.u32 %s4497_s22, 4  ;;  %s4415_s16 = int_to_ptr.vmem [resolvable:$false] %s4414_s16 }
  0x33   : > { %v4114_v39 = vld [vmem:[%s6752_s3 + $0x64] ss:$8 sps:$4 sm:$0xff]   ;;  %v247_v42 = vld [vmem:[%s4610_s8 + $0x70] sm:$0xff]  ;;  %v4118_v43 = vld [vmem:[%s6752_s3 + $0x60] ss:$8 sps:$4 sm:$0xff]   ;;  %s4416_s17 = scalar_lea.vmem %s4415_s16, 64  ;;  %p4417_p6 = scmp.lt.s32.totalorder %s6702_s10, %s4415_s16 }
  0x34   : > { %291 = vperm.xlu1 %4077, %v238_v13   ;;  %288 = vperm.xlu0 %4076, %v237_v14   ;;  %v4116_v40 = vld [vmem:[%s6752_s3 + $0x264] ss:$8 sps:$4 sm:$0xff]   ;;  %v4119_v44 = vld [vmem:[%s6752_s3 + $0x260] ss:$8 sps:$4 sm:$0xff]   ;;  %v4120_v45 = vld [vmem:[%s6752_s3 + $0x74] ss:$8 sps:$4 sm:$0xff]   ;;  %p4413_p5 = pneg %p4412_p4  ;;  %p4418_p7 = scmp.lt.s32.totalorder %s4416_s17, %s4410_s15 }
  0x35   : > { %2042 = vmatpush1.bf16.msra.mxu1 %v4100_v25  ;;  %2428 = vmatpush1.bf16.msra.mxu0 %v4101_v26  ;;  %v250_v46 = vld [vmem:[%s4610_s8 + $0x88] sm:$0xff]  ;;  %v4122_v47 = vld [vmem:[%s6752_s3 + $0x274] ss:$8 sps:$4 sm:$0xff]   ;;  %v249_v48 = vld [vmem:[%s4610_s8 + $0x80] sm:$0xff] }
  0x36   : > { %2043 = vmatprep.subr.bf16.mxu1 %v4102_v28  ;;  %2429 = vmatprep.subr.bf16.mxu0 %v4104_v30  ;;  %v4124_v49 = vld [vmem:[%s6752_s3 + $0x70] ss:$8 sps:$4 sm:$0xff]   ;;  %v4126_v51 = vld [vmem:[%s6752_s3 + $0x84] ss:$8 sps:$4 sm:$0xff]   ;;  %v4130_v55 = vld [vmem:[%s6752_s3 + $0x80] ss:$8 sps:$4 sm:$0xff]   ;;  %p4419_p8 = por %p4418_p7, %p4417_p6 }
  0x37   : > { %v4125_v50 = vld [vmem:[%s6752_s3 + $0x270] ss:$8 sps:$4 sm:$0xff]   ;;  %v4128_v52 = vld [vmem:[%s6752_s3 + $0x284] ss:$8 sps:$4 sm:$0xff]   ;;  %v4131_v56 = vld [vmem:[%s6752_s3 + $0x280] ss:$8 sps:$4 sm:$0xff]  }
  0x38   : > { %297 = vperm.xlu1 %4077, %v240_v15   ;;  %294 = vperm.xlu0 %4076, %v239_v16   ;;  %v252_v53 = vld [vmem:[%s4610_s8 + $0x98] sm:$0xff]  ;;  %v251_v54 = vld [vmem:[%s4610_s8 + $0x90] sm:$0xff]  ;;  %v254_v58 = vld [vmem:[%s4610_s8 + $0xa8] sm:$0xff]  ;;  %p4420_p10 = pnand %p4419_p8, %p4413_p5 }
  0x39   : > { %2044 = vmatpush1.bf16.msra.mxu1 %v4106_v31  ;;  %2430 = vmatpush1.bf16.msra.mxu0 %v4107_v32  ;;  %v4132_v57 = vld [vmem:[%s6752_s3 + $0x94] ss:$8 sps:$4 sm:$0xff]   ;;  %v253_v60 = vld [vmem:[%s4610_s8 + $0xa0] sm:$0xff]  ;;  %v4136_v61 = vld [vmem:[%s6752_s3 + $0x90] ss:$8 sps:$4 sm:$0xff]  }
  0x3a   : > { %2045 = vmatprep.subr.bf16.mxu1 %v4108_v33  ;;  %2431 = vmatprep.subr.bf16.mxu0 %v4110_v35  ;;  %v4134_v59 = vld [vmem:[%s6752_s3 + $0x294] ss:$8 sps:$4 sm:$0xff]   ;;  %v4137_v62 = vld [vmem:[%s6752_s3 + $0x290] ss:$8 sps:$4 sm:$0xff]   ;;  %v4138_v63 = vld [vmem:[%s6752_s3 + $0xa4] ss:$8 sps:$4 sm:$0xff]   ;;  %v6754_v35 = vlaneseq }
  0x3b   : > { %v4140_v0 = vld [vmem:[%s6752_s3 + $0x2a4] ss:$8 sps:$4 sm:$0xff]   ;;  %v256_v1 = vld [vmem:[%s4610_s8 + $0xb8] sm:$0xff]  ;;  %v255_v2 = vld [vmem:[%s4610_s8 + $0xb0] sm:$0xff] }
  0x3c   : > { %303 = vperm.xlu1 %4077, %v242_v19   ;;  %300 = vperm.xlu0 %4076, %v241_v20   ;;  %v4142_v3 = vld [vmem:[%s6752_s3 + $0xa0] ss:$8 sps:$4 sm:$0xff]   ;;  %v4144_v5 = vld [vmem:[%s6752_s3 + $0xb4] ss:$8 sps:$4 sm:$0xff]   ;;  %v4148_v9 = vld [vmem:[%s6752_s3 + $0xb0] ss:$8 sps:$4 sm:$0xff]  }
  0x3d   : > { %2046 = vmatpush1.bf16.msra.mxu1 %v4112_v37  ;;  %2432 = vmatpush1.bf16.msra.mxu0 %v4113_v38  ;;  %v4143_v4 = vld [vmem:[%s6752_s3 + $0x2a0] ss:$8 sps:$4 sm:$0xff]   ;;  %v4146_v7 = vld [vmem:[%s6752_s3 + $0x2b4] ss:$8 sps:$4 sm:$0xff]   ;;  %v4149_v10 = vld [vmem:[%s6752_s3 + $0x2b0] ss:$8 sps:$4 sm:$0xff]  }
  0x3e   : > { %2047 = vmatprep.subr.bf16.mxu1 %v4114_v39  ;;  %2433 = vmatprep.subr.bf16.mxu0 %v4116_v40  ;;  %v258_v6 = vld [vmem:[%s4610_s8 + $0xc8] sm:$0xff]  ;;  %v257_v8 = vld [vmem:[%s4610_s8 + $0xc0] sm:$0xff]  ;;  %v260_v12 = vld [vmem:[%s4610_s8 + $0xd8] sm:$0xff] }
  0x3f   : > { %v4150_v11 = vld [vmem:[%s6752_s3 + $0xc4] ss:$8 sps:$4 sm:$0xff]   ;;  %v259_v14 = vld [vmem:[%s4610_s8 + $0xd0] sm:$0xff]  ;;  %v4154_v15 = vld [vmem:[%s6752_s3 + $0xc0] ss:$8 sps:$4 sm:$0xff]  }
  0x40   : > { %309 = vperm.xlu1 %4077, %v244_v27   ;;  %306 = vperm.xlu0 %4076, %v243_v29   ;;  %v4152_v13 = vld [vmem:[%s6752_s3 + $0x2c4] ss:$8 sps:$4 sm:$0xff]   ;;  %v4155_v16 = vld [vmem:[%s6752_s3 + $0x2c0] ss:$8 sps:$4 sm:$0xff]   ;;  %v4156_v17 = vld [vmem:[%s6752_s3 + $0xd4] ss:$8 sps:$4 sm:$0xff]  }
  0x41   : > { %2048 = vmatpush1.bf16.msra.mxu1 %v4118_v43  ;;  %2434 = vmatpush1.bf16.msra.mxu0 %v4119_v44  ;;  %v262_v18 = vld [vmem:[%s4610_s8 + $0xe8] sm:$0xff]  ;;  %v4158_v19 = vld [vmem:[%s6752_s3 + $0x2d4] ss:$8 sps:$4 sm:$0xff]   ;;  %v261_v20 = vld [vmem:[%s4610_s8 + $0xe0] sm:$0xff] }
  0x42   : > { %2049 = vmatprep.subr.bf16.mxu1 %v4120_v45  ;;  %2435 = vmatprep.subr.bf16.mxu0 %v4122_v47  ;;  %v4160_v21 = vld [vmem:[%s6752_s3 + $0xd0] ss:$8 sps:$4 sm:$0xff]   ;;  %v4162_v23 = vld [vmem:[%s6752_s3 + $0xe4] ss:$8 sps:$4 sm:$0xff]   ;;  %v4166_v27 = vld [vmem:[%s6752_s3 + $0xe0] ss:$8 sps:$4 sm:$0xff]  }
  0x43   : > { %v4161_v22 = vld [vmem:[%s6752_s3 + $0x2d0] ss:$8 sps:$4 sm:$0xff]   ;;  %v4164_v25 = vld [vmem:[%s6752_s3 + $0x2e4] ss:$8 sps:$4 sm:$0xff]   ;;  %v4167_v28 = vld [vmem:[%s6752_s3 + $0x2e0] ss:$8 sps:$4 sm:$0xff]  }
  0x44   : > { %315 = vperm.xlu1 %4077, %v246_v34   ;;  %312 = vperm.xlu0 %4076, %v245_v36   ;;  %v264_v24 = vld [vmem:[%s4610_s8 + $0xf8] sm:$0xff]  ;;  %v263_v26 = vld [vmem:[%s4610_s8 + $0xf0] sm:$0xff]  ;;  %v4176_v33 = vld [vmem:[%s6752_s3 + $0x104] ss:$8 sps:$4 sm:$0xff]   ;;  %v4822_v36 = vand.u32 127, %v6754_v35  ;;  %v7008_v35 = vmov 0 }
  0x45   : > { %2050 = vmatpush1.bf16.msra.mxu1 %v4124_v49  ;;  %2436 = vmatpush1.bf16.msra.mxu0 %v4125_v50  ;;  %v4168_v29 = vld [vmem:[%s6752_s3 + $0xf4] ss:$8 sps:$4 sm:$0xff]   ;;  %v4172_v31 = vld [vmem:[%s6752_s3 + $0xf0] ss:$8 sps:$4 sm:$0xff]   ;;  %v4179_v34 = vld [vmem:[%s6752_s3 + $0x304] ss:$8 sps:$4 sm:$0xff]  }
  0x46   : > { %2051 = vmatprep.subr.bf16.mxu1 %v4126_v51  ;;  %2437 = vmatprep.subr.bf16.mxu0 %v4128_v52  ;;  %v4170_v30 = vld [vmem:[%s6752_s3 + $0x2f4] ss:$8 sps:$4 sm:$0xff]   ;;  %v4173_v32 = vld [vmem:[%s6752_s3 + $0x2f0] ss:$8 sps:$4 sm:$0xff]   ;;  %v4829_v39 = vadd.s32 128, %v4822_v36  ;;  %v4832_v40 = vadd.s32 640, %v4822_v36 }
  0x47   : > { %v4174_v44 = vld [vmem:[%s6752_s3 + $0x100] ss:$8 sps:$4 sm:$0xff]   ;;  %v6758_v45 = vmov 1.0|1.0   ;;  %v4182_v47 = vld [vmem:[%s6752_s3 + $0x114] ss:$8 sps:$4 sm:$0xff]  }
  0x48   : > { %321 = vperm.xlu1 %4077, %v248_v41   ;;  %318 = vperm.xlu0 %4076, %v247_v42   ;;  %v4837_v42 = vadd.s32 512, %v4822_v36  ;;  %v4180_v49 = vld [vmem:[%s6752_s3 + $0x110] ss:$8 sps:$4 sm:$0xff]   ;;  %s2996_s8 = scalar_lea.sflag [#allocation5], %s213_s11 }
  0x49   : > { %2052 = vmatpush1.bf16.msra.mxu1 %v4130_v55  ;;  %2438 = vmatpush1.bf16.msra.mxu0 %v4131_v56  ;;  %v4183_v52 = vld [vmem:[%s6752_s3 + $0x310] ss:$8 sps:$4 sm:$0xff]   ;;  %v4186_v55 = vld [vmem:[%s6752_s3 + $0x120] ss:$8 sps:$4 sm:$0xff]  }
  0x4a   : > { %2053 = vmatprep.subr.bf16.mxu1 %v4132_v57  ;;  %2439 = vmatprep.subr.bf16.mxu0 %v4134_v59  ;;  %v4189_v56 = vld [vmem:[%s6752_s3 + $0x320] ss:$8 sps:$4 sm:$0xff]   ;;  %v4194_v57 = vld [vmem:[%s6752_s3 + $0x134] ss:$8 sps:$4 sm:$0xff]  }
  0x4c   : > { %327 = vperm.xlu1 %4077, %v250_v46   ;;  %324 = vperm.xlu0 %4076, %v249_v48   ;;  %v4177_v46 = vld [vmem:[%s6752_s3 + $0x300] ss:$8 sps:$4 sm:$0xff]   ;;  %v4185_v48 = vld [vmem:[%s6752_s3 + $0x314] ss:$8 sps:$4 sm:$0xff]  }
  0x4d   : > { %2054 = vmatpush1.bf16.msra.mxu1 %v4136_v61  ;;  %2440 = vmatpush1.bf16.msra.mxu0 %v4137_v62  ;;  %v4192_v61 = vld [vmem:[%s6752_s3 + $0x130] ss:$8 sps:$4 sm:$0xff]  }
  0x4e   : > { %2055 = vmatprep.subr.bf16.mxu1 %v4138_v63  ;;  %2441 = vmatprep.subr.bf16.mxu0 %v4140_v0  ;;  %v4195_v62 = vld [vmem:[%s6752_s3 + $0x330] ss:$8 sps:$4 sm:$0xff]   ;;  %v4200_v63 = vld [vmem:[%s6752_s3 + $0x144] ss:$8 sps:$4 sm:$0xff]  }
  0x4f   : > { %v4203_v0 = vld [vmem:[%s6752_s3 + $0x344] ss:$8 sps:$4 sm:$0xff]  }
  0x50   : > { %333 = vperm.xlu1 %4077, %v252_v53   ;;  %330 = vperm.xlu0 %4076, %v251_v54   ;;  %v4188_v53 = vld [vmem:[%s6752_s3 + $0x124] ss:$8 sps:$4 sm:$0xff]  }
  0x51   : > { %2056 = vmatpush1.bf16.msra.mxu1 %v4142_v3  ;;  %2442 = vmatpush1.bf16.msra.mxu0 %v4143_v4  ;;  %v4191_v54 = vld [vmem:[%s6752_s3 + $0x324] ss:$8 sps:$4 sm:$0xff]   ;;  %v4206_v3 = vld [vmem:[%s6752_s3 + $0x154] ss:$8 sps:$4 sm:$0xff]  }
  0x52   : > { %2057 = vmatprep.subr.bf16.mxu1 %v4144_v5  ;;  %2443 = vmatprep.subr.bf16.mxu0 %v4146_v7  ;;  %v4209_v4 = vld [vmem:[%s6752_s3 + $0x354] ss:$8 sps:$4 sm:$0xff]   ;;  %v4204_v7 = vld [vmem:[%s6752_s3 + $0x150] ss:$8 sps:$4 sm:$0xff]  }
  0x54   : > { %339 = vperm.xlu1 %4077, %v254_v58   ;;  %336 = vperm.xlu0 %4076, %v253_v60   ;;  %v4197_v58 = vld [vmem:[%s6752_s3 + $0x334] ss:$8 sps:$4 sm:$0xff]  }
  0x55   : > { %2058 = vmatpush1.bf16.msra.mxu1 %v4148_v9  ;;  %2444 = vmatpush1.bf16.msra.mxu0 %v4149_v10  ;;  %v4212_v9 = vld [vmem:[%s6752_s3 + $0x164] ss:$8 sps:$4 sm:$0xff]  }
  0x56   : > { %2059 = vmatprep.subr.bf16.mxu1 %v4150_v11  ;;  %2445 = vmatprep.subr.bf16.mxu0 %v4152_v13  ;;  %v4215_v10 = vld [vmem:[%s6752_s3 + $0x364] ss:$8 sps:$4 sm:$0xff]   ;;  %v4210_v11 = vld [vmem:[%s6752_s3 + $0x160] ss:$8 sps:$4 sm:$0xff]   ;;  %v4218_v13 = vld [vmem:[%s6752_s3 + $0x174] ss:$8 sps:$4 sm:$0xff]  }
  0x58   : > { %345 = vperm.xlu1 %4077, %v256_v1   ;;  %342 = vperm.xlu0 %4076, %v255_v2   ;;  %v4198_v1 = vld [vmem:[%s6752_s3 + $0x140] ss:$8 sps:$4 sm:$0xff]  }
  0x59   : > { %2060 = vmatpush1.bf16.msra.mxu1 %v4154_v15  ;;  %2446 = vmatpush1.bf16.msra.mxu0 %v4155_v16  ;;  %v4201_v2 = vld [vmem:[%s6752_s3 + $0x340] ss:$8 sps:$4 sm:$0xff]  }
  0x5a   : > { %2061 = vmatprep.subr.bf16.mxu1 %v4156_v17  ;;  %2447 = vmatprep.subr.bf16.mxu0 %v4158_v19  ;;  %v4216_v17 = vld [vmem:[%s6752_s3 + $0x170] ss:$8 sps:$4 sm:$0xff]   ;;  %v4224_v19 = vld [vmem:[%s6752_s3 + $0x184] ss:$8 sps:$4 sm:$0xff]  }
  0x5c   : > { %351 = vperm.xlu1 %4077, %v258_v6   ;;  %348 = vperm.xlu0 %4076, %v257_v8   ;;  %v4207_v8 = vld [vmem:[%s6752_s3 + $0x350] ss:$8 sps:$4 sm:$0xff]  }
  0x5d   : > { %2062 = vmatpush1.bf16.msra.mxu1 %v4160_v21  ;;  %2448 = vmatpush1.bf16.msra.mxu0 %v4161_v22  ;;  %v4222_v21 = vld [vmem:[%s6752_s3 + $0x180] ss:$8 sps:$4 sm:$0xff]  }
  0x5e   : > { %2063 = vmatprep.subr.bf16.mxu1 %v4162_v23  ;;  %2449 = vmatprep.subr.bf16.mxu0 %v4164_v25  ;;  %v4225_v22 = vld [vmem:[%s6752_s3 + $0x380] ss:$8 sps:$4 sm:$0xff]   ;;  %v4230_v23 = vld [vmem:[%s6752_s3 + $0x194] ss:$8 sps:$4 sm:$0xff]  }
  0x60   : > { %357 = vperm.xlu1 %4077, %v260_v12   ;;  %354 = vperm.xlu0 %4076, %v259_v14   ;;  %v4213_v12 = vld [vmem:[%s6752_s3 + $0x360] ss:$8 sps:$4 sm:$0xff]   ;;  %v4221_v14 = vld [vmem:[%s6752_s3 + $0x374] ss:$8 sps:$4 sm:$0xff]  }
  0x61   : > { %2064 = vmatpush1.bf16.msra.mxu1 %v4166_v27  ;;  %2450 = vmatpush1.bf16.msra.mxu0 %v4167_v28  ;;  %v4228_v27 = vld [vmem:[%s6752_s3 + $0x190] ss:$8 sps:$4 sm:$0xff]  }
  0x62   : > { %2065 = vmatprep.subr.bf16.mxu1 %v4168_v29  ;;  %2451 = vmatprep.subr.bf16.mxu0 %v4170_v30  ;;  %v4231_v28 = vld [vmem:[%s6752_s3 + $0x390] ss:$8 sps:$4 sm:$0xff]   ;;  %v4236_v29 = vld [vmem:[%s6752_s3 + $0x1a4] ss:$8 sps:$4 sm:$0xff]  }
  0x63   : > { %v4239_v30 = vld [vmem:[%s6752_s3 + $0x3a4] ss:$8 sps:$4 sm:$0xff]  }
  0x64   : > { %363 = vperm.xlu1 %4077, %v262_v18   ;;  %360 = vperm.xlu0 %4076, %v261_v20   ;;  %v4219_v18 = vld [vmem:[%s6752_s3 + $0x370] ss:$8 sps:$4 sm:$0xff]   ;;  %v4227_v20 = vld [vmem:[%s6752_s3 + $0x384] ss:$8 sps:$4 sm:$0xff]  }
  0x65   : > { %2066 = vmatpush1.bf16.msra.mxu1 %v4172_v31  ;;  %2452 = vmatpush1.bf16.msra.mxu0 %v4173_v32  ;;  %v4234_v31 = vld [vmem:[%s6752_s3 + $0x1a0] ss:$8 sps:$4 sm:$0xff]  }
  0x66   : > { %2228 = vmatprep.subr.bf16.mxu1 %v4176_v33  ;;  %2614 = vmatprep.subr.bf16.mxu0 %v4179_v34  ;;  %v4237_v32 = vld [vmem:[%s6752_s3 + $0x3a0] ss:$8 sps:$4 sm:$0xff]   ;;  %v4242_v33 = vld [vmem:[%s6752_s3 + $0x1b4] ss:$8 sps:$4 sm:$0xff]  }
  0x68   : > { %369 = vperm.xlu1 %4077, %v264_v24   ;;  %366 = vperm.xlu0 %4076, %v263_v26   ;;  %v4233_v24 = vld [vmem:[%s6752_s3 + $0x394] ss:$8 sps:$4 sm:$0xff]  }
  0xab   : > { %v4824_v37 = vpop.permute.xlu1 %282  ;;  %v4826_v38 = vpop.permute.xlu0 %276 }
  0xac   : > { %vm372_vm0 = vcmp.eq.s32.totalorder %v4829_v39, %v4826_v38  ;;  %vm376_vm5 = vcmp.eq.s32.totalorder %v4832_v40, %v4826_v38  ;;  %vm371_vm8 = vcmp.eq.s32.totalorder %v4822_v36, %v4826_v38  ;;  %vm388_vm9 = vcmp.eq.s32.totalorder %v4829_v39, %v4824_v37 }
  0xad   : > { %vm375_vm12 = vcmp.eq.s32.totalorder %v4837_v42, %v4826_v38  ;;  %vm392_vm13 = vcmp.eq.s32.totalorder %v4832_v40, %v4824_v37 }
  0xaf   : > { %v4834_v41 = vpop.permute.xlu0 %279  ;;  %v4839_v43 = vpop.permute.xlu1 %285 }
  0xb0   : > { %vm380_vm1 = vcmp.eq.s32.totalorder %v4829_v39, %v4834_v41  ;;  %vm384_vm2 = vcmp.eq.s32.totalorder %v4832_v40, %v4834_v41  ;;  %vm379_vm3 = vcmp.eq.s32.totalorder %v4822_v36, %v4834_v41  ;;  %vm383_vm6 = vcmp.eq.s32.totalorder %v4837_v42, %v4834_v41 }
  0xb1   : > { %vm3497_vm4 = vmpackc.low %vm380_vm1, %vm372_vm0  ;;  %vm396_vm10 = vcmp.eq.s32.totalorder %v4829_v39, %v4839_v43  ;;  %vm400_vm14 = vcmp.eq.s32.totalorder %v4832_v40, %v4839_v43 }
  0xb2   : > { %3498 = vmatprep.mubr.msk.bf16.mxu1 %vm3497_vm4, %v6758_v45  ;;  %vm3625_vm7 = vmpackc.low %vm384_vm2, %vm376_vm5  ;;  %vm387_vm2 = vcmp.eq.s32.totalorder %v4822_v36, %v4824_v37  ;;  %vm391_vm4 = vcmp.eq.s32.totalorder %v4837_v42, %v4824_v37  ;;  %vm399_vm5 = vcmp.eq.s32.totalorder %v4837_v42, %v4839_v43 }
  0xb3   : > { %3626 = vmatprep.mubr.msk.bf16.mxu0 %vm3625_vm7, %v6758_v45  ;;  %vm3499_vm11 = vmpackc.low %vm379_vm3, %vm371_vm8  ;;  %v4887_v50 = vpop.permute.xlu1 %291  ;;  %v4889_v51 = vpop.permute.xlu0 %288  ;;  %vm395_vm3 = vcmp.eq.s32.totalorder %v4822_v36, %v4839_v43 }
  0xb4   : > { %3500 = vmatmul.mubr.msk.bf16.vlgmr.msra.gmra.mrb[0].mxu1 %vm3499_vm11, %v6758_v45  ;;  %vm3627_vm15 = vmpackc.low %vm383_vm6, %vm375_vm12  ;;  %vm404_vm6 = vcmp.eq.s32.totalorder %v4829_v39, %v4889_v51  ;;  %vm412_vm7 = vcmp.eq.s32.totalorder %v4829_v39, %v4887_v50 }
  0xb5   : > { %3628 = vmatmul.mubr.msk.bf16.vlgmr.msra.gmra.mrb[0].mxu0 %vm3627_vm15, %v6758_v45  ;;  %vm3501_vm0 = vmpackc.low %vm396_vm10, %vm388_vm9  ;;  %2229 = vmatpush1.bf16.msra.mxu1 %v4174_v44  ;;  %vm408_vm9 = vcmp.eq.s32.totalorder %v4832_v40, %v4889_v51  ;;  %vm416_vm10 = vcmp.eq.s32.totalorder %v4832_v40, %v4887_v50  ;;  %vm411_vm15 = vcmp.eq.s32.totalorder %v4822_v36, %v4887_v50 }
  0xb6   : > { %3502 = vmatprep.mubr.msk.bf16.mxu1 %vm3501_vm0, %v6758_v45  ;;  %vm3629_vm1 = vmpackc.low %vm400_vm14, %vm392_vm13  ;;  %2615 = vmatpush1.bf16.msra.mxu0 %v4177_v46  ;;  %vm403_vm14 = vcmp.eq.s32.totalorder %v4822_v36, %v4889_v51  ;;  %vm407_vm0 = vcmp.eq.s32.totalorder %v4837_v42, %v4889_v51  ;;  %v4245_v46 = vld [vmem:[%s6752_s3 + $0x3b4] ss:$8 sps:$4 sm:$0xff]  }
  0xb7   : > { %3630 = vmatprep.mubr.msk.bf16.mxu0 %vm3629_vm1, %v6758_v45  ;;  %2230 = vmatprep.subr.bf16.mxu1 %v4182_v47  ;;  %vm3503_vm8 = vmpackc.low %vm395_vm3, %vm387_vm2  ;;  %v4933_v59 = vpop.permute.xlu1 %297  ;;  %v4935_v60 = vpop.permute.xlu0 %294  ;;  %vm415_vm1 = vcmp.eq.s32.totalorder %v4837_v42, %v4887_v50  ;;  %v4240_v47 = vld [vmem:[%s6752_s3 + $0x1b0] ss:$8 sps:$4 sm:$0xff]  }
  0xb8   : > { %2616 = vmatprep.subr.bf16.mxu0 %v4185_v48  ;;  %vm3631_vm11 = vmpackc.low %vm399_vm5, %vm391_vm4  ;;  %vm420_vm2 = vcmp.eq.s32.totalorder %v4829_v39, %v4935_v60  ;;  %vm428_vm3 = vcmp.eq.s32.totalorder %v4829_v39, %v4933_v59  ;;  %vm424_vm5 = vcmp.eq.s32.totalorder %v4832_v40, %v4935_v60  ;;  %v4243_v48 = vld [vmem:[%s6752_s3 + $0x3b0] ss:$8 sps:$4 sm:$0xff]  }
  0xb9   : > { %2231 = vmatpush1.bf16.msra.mxu1 %v4180_v49  ;;  %vm3505_vm12 = vmpackc.low %vm412_vm7, %vm404_vm6  ;;  %vm432_vm6 = vcmp.eq.s32.totalorder %v4832_v40, %v4933_v59  ;;  %v4248_v49 = vld [vmem:[%s6752_s3 + $0x1c4] ss:$8 sps:$4 sm:$0xff]  }
  0xba   : > { %2617 = vmatpush1.bf16.msra.mxu0 %v4183_v52  ;;  %2232 = vmatprep.subr.bf16.mxu1 %v4188_v53  ;;  %vm3633_vm13 = vmpackc.low %vm416_vm10, %vm408_vm9  ;;  %vm419_vm10 = vcmp.eq.s32.totalorder %v4822_v36, %v4935_v60  ;;  %v4251_v52 = vld [vmem:[%s6752_s3 + $0x3c4] ss:$8 sps:$4 sm:$0xff]  }
  0xbb   : > { %2618 = vmatprep.subr.bf16.mxu0 %v4191_v54  ;;  %vm3507_vm4 = vmpackc.low %vm411_vm15, %vm403_vm14  ;;  %v4984_v5 = vpop.permute.xlu1 %303  ;;  %v4986_v6 = vpop.permute.xlu0 %300 }
  0xbc   : > { %3504 = vmatmul.mubr.msk.bf16.gmra.mrb[4].mxu1 %vm3503_vm8, %v6758_v45  ;;  %vm3635_vm7 = vmpackc.low %vm415_vm1, %vm407_vm0  ;;  %vm436_vm14 = vcmp.eq.s32.totalorder %v4829_v39, %v4986_v6  ;;  %vm444_vm15 = vcmp.eq.s32.totalorder %v4829_v39, %v4984_v5  ;;  %vm440_vm1 = vcmp.eq.s32.totalorder %v4832_v40, %v4986_v6 }
  0xbd   : > { %3632 = vmatmul.mubr.msk.bf16.gmra.mrb[4].mxu0 %vm3631_vm11, %v6758_v45  ;;  %3506 = vmatprep.mubr.msk.bf16.mxu1 %vm3505_vm12, %v6758_v45  ;;  %vm3509_vm8 = vmpackc.low %vm428_vm3, %vm420_vm2  ;;  %vm427_vm11 = vcmp.eq.s32.totalorder %v4822_v36, %v4933_v59  ;;  %vm423_vm12 = vcmp.eq.s32.totalorder %v4837_v42, %v4935_v60  ;;  %vm448_vm2 = vcmp.eq.s32.totalorder %v4832_v40, %v4984_v5 }
  0xbe   : > { %3634 = vmatprep.mubr.msk.bf16.mxu0 %vm3633_vm13, %v6758_v45  ;;  %2233 = vmatpush1.bf16.msra.mxu1 %v4186_v55  ;;  %vm3637_vm9 = vmpackc.low %vm432_vm6, %vm424_vm5  ;;  %vm431_vm13 = vcmp.eq.s32.totalorder %v4837_v42, %v4933_v59  ;;  %vm435_vm6 = vcmp.eq.s32.totalorder %v4822_v36, %v4986_v6  ;;  %v4246_v55 = vld [vmem:[%s6752_s3 + $0x1c0] ss:$8 sps:$4 sm:$0xff]  }
  0xbf   : > { %2619 = vmatpush1.bf16.msra.mxu0 %v4189_v56  ;;  %2234 = vmatprep.subr.bf16.mxu1 %v4194_v57  ;;  %vm3511_vm0 = vmpackc.low %vm427_vm11, %vm419_vm10  ;;  %v5035_v15 = vpop.permute.xlu1 %309  ;;  %v5037_v16 = vpop.permute.xlu0 %306  ;;  %v4249_v56 = vld [vmem:[%s6752_s3 + $0x3c0] ss:$8 sps:$4 sm:$0xff]   ;;  %v4254_v57 = vld [vmem:[%s6752_s3 + $0x1d4] ss:$8 sps:$4 sm:$0xff]  }
  0xc0   : > { %2620 = vmatprep.subr.bf16.mxu0 %v4197_v58  ;;  %vm3639_vm3 = vmpackc.low %vm431_vm13, %vm423_vm12  ;;  %vm452_vm10 = vcmp.eq.s32.totalorder %v4829_v39, %v5037_v16  ;;  %vm460_vm11 = vcmp.eq.s32.totalorder %v4829_v39, %v5035_v15  ;;  %vm456_vm13 = vcmp.eq.s32.totalorder %v4832_v40, %v5037_v16  ;;  %v4257_v58 = vld [vmem:[%s6752_s3 + $0x3d4] ss:$8 sps:$4 sm:$0xff]  }
  0xc1   : > { %vm3641_vm5 = vmpackc.low %vm448_vm2, %vm440_vm1  ;;  %vm451_vm2 = vcmp.eq.s32.totalorder %v4822_v36, %v5037_v16 }
  0xc2   : > { %2235 = vmatpush1.bf16.msra.mxu1 %v4192_v61  ;;  %v4252_v61 = vld [vmem:[%s6752_s3 + $0x1d0] ss:$8 sps:$4 sm:$0xff]  }
  0xc3   : > { %2621 = vmatpush1.bf16.msra.mxu0 %v4195_v62  ;;  %2236 = vmatprep.subr.bf16.mxu1 %v4200_v63  ;;  %v5086_v25 = vpop.permute.xlu1 %315  ;;  %v5088_v26 = vpop.permute.xlu0 %312  ;;  %v4255_v62 = vld [vmem:[%s6752_s3 + $0x3d0] ss:$8 sps:$4 sm:$0xff]   ;;  %v4260_v63 = vld [vmem:[%s6752_s3 + $0x1e4] ss:$8 sps:$4 sm:$0xff]  }
  0xc4   : > { %3508 = vmatmul.mubr.msk.bf16.gmra.mrb[8].mxu1 %vm3507_vm4, %v6758_v45  ;;  %2622 = vmatprep.subr.bf16.mxu0 %v4203_v0  ;;  %vm3513_vm4 = vmpackc.low %vm444_vm15, %vm436_vm14  ;;  %vm464_vm14 = vcmp.eq.s32.totalorder %v4832_v40, %v5035_v15 }
  0xc5   : > { %3636 = vmatmul.mubr.msk.bf16.gmra.mrb[8].mxu0 %vm3635_vm7, %v6758_v45  ;;  %3510 = vmatprep.mubr.msk.bf16.mxu1 %vm3509_vm8, %v6758_v45  ;;  %vm443_vm7 = vcmp.eq.s32.totalorder %v4822_v36, %v4984_v5  ;;  %vm439_vm8 = vcmp.eq.s32.totalorder %v4837_v42, %v4986_v6  ;;  %vm3645_vm1 = vmpackc.low %vm464_vm14, %vm456_vm13  ;;  %vm467_vm14 = vcmp.eq.s32.totalorder %v4822_v36, %v5088_v26 }
  0xc6   : > { %3638 = vmatprep.mubr.msk.bf16.mxu0 %vm3637_vm9, %v6758_v45  ;;  %2237 = vmatpush1.bf16.msra.mxu1 %v4198_v1  ;;  %vm447_vm9 = vcmp.eq.s32.totalorder %v4837_v42, %v4984_v5  ;;  %vm3515_vm12 = vmpackc.low %vm443_vm7, %vm435_vm6  ;;  %vm468_vm6 = vcmp.eq.s32.totalorder %v4829_v39, %v5088_v26  ;;  %vm476_vm7 = vcmp.eq.s32.totalorder %v4829_v39, %v5086_v25 }
  0xc7   : > { %2623 = vmatpush1.bf16.msra.mxu0 %v4201_v2  ;;  %2238 = vmatprep.subr.bf16.mxu1 %v4206_v3  ;;  %vm3643_vm15 = vmpackc.low %vm447_vm9, %vm439_vm8  ;;  %vm472_vm9 = vcmp.eq.s32.totalorder %v4832_v40, %v5088_v26  ;;  %v5128_v34 = vpop.permute.xlu1 %321  ;;  %v5130_v44 = vpop.permute.xlu0 %318  ;;  %v4263_v2 = vld [vmem:[%s6752_s3 + $0x3e4] ss:$8 sps:$4 sm:$0xff]   ;;  %v6849_v3 = vmov 0 }
  0xc8   : > { %2624 = vmatprep.subr.bf16.mxu0 %v4209_v4  ;;  %v6851_v4 = vmov 0 }
  0xca   : > { %2239 = vmatpush1.bf16.msra.mxu1 %v4204_v7  ;;  %v4258_v7 = vld [vmem:[%s6752_s3 + $0x1e0] ss:$8 sps:$4 sm:$0xff]  }
  0xcb   : > { %2625 = vmatpush1.bf16.msra.mxu0 %v4207_v8  ;;  %2240 = vmatprep.subr.bf16.mxu1 %v4212_v9  ;;  %v5172_v53 = vpop.permute.xlu1 %327  ;;  %v5174_v54 = vpop.permute.xlu0 %324  ;;  %v5259_v8 = vadd.s32 384, %v4822_v36  ;;  %v6931_v9 = vmov 0 }
  0xcc   : > { %3512 = vmatmul.mubr.msk.bf16.gmra.mrb[12].mxu1 %vm3511_vm0, %v6758_v45  ;;  %2626 = vmatprep.subr.bf16.mxu0 %v4215_v10  ;;  %vm3517_vm0 = vmpackc.low %vm460_vm11, %vm452_vm10  ;;  %vm480_vm10 = vcmp.eq.s32.totalorder %v4832_v40, %v5086_v25  ;;  %v4261_v10 = vld [vmem:[%s6752_s3 + $0x3e0] ss:$8 sps:$4 sm:$0xff]  }
  0xcd   : > { %3640 = vmatmul.mubr.msk.bf16.gmra.mrb[12].mxu0 %vm3639_vm3, %v6758_v45  ;;  %3514 = vmatprep.mubr.msk.bf16.mxu1 %vm3513_vm4, %v6758_v45  ;;  %vm459_vm3 = vcmp.eq.s32.totalorder %v4822_v36, %v5035_v15  ;;  %vm455_vm4 = vcmp.eq.s32.totalorder %v4837_v42, %v5037_v16  ;;  %vm3649_vm13 = vmpackc.low %vm480_vm10, %vm472_vm9  ;;  %vm483_vm10 = vcmp.eq.s32.totalorder %v4822_v36, %v5130_v44 }
  0xce   : > { %3642 = vmatprep.mubr.msk.bf16.mxu0 %vm3641_vm5, %v6758_v45  ;;  %2241 = vmatpush1.bf16.msra.mxu1 %v4210_v11  ;;  %vm463_vm5 = vcmp.eq.s32.totalorder %v4837_v42, %v5035_v15  ;;  %vm3519_vm8 = vmpackc.low %vm459_vm3, %vm451_vm2  ;;  %vm484_vm2 = vcmp.eq.s32.totalorder %v4829_v39, %v5130_v44  ;;  %vm492_vm3 = vcmp.eq.s32.totalorder %v4829_v39, %v5128_v34  ;;  %v5273_v11 = vadd.s32 896, %v4822_v36 }
  0xcf   : > { %2627 = vmatpush1.bf16.msra.mxu0 %v4213_v12  ;;  %2242 = vmatprep.subr.bf16.mxu1 %v4218_v13  ;;  %vm3647_vm11 = vmpackc.low %vm463_vm5, %vm455_vm4  ;;  %vm488_vm5 = vcmp.eq.s32.totalorder %v4832_v40, %v5130_v44  ;;  %v5219_v0 = vpop.permute.xlu1 %333  ;;  %v5221_v1 = vpop.permute.xlu0 %330  ;;  %v4266_v12 = vld [vmem:[%s6752_s3 + $0x1f4] ss:$8 sps:$4 sm:$0xff]   ;;  %v5279_v13 = vadd.s32 256, %v4822_v36 }
  0xd0   : > { %2628 = vmatprep.subr.bf16.mxu0 %v4221_v14  ;;  %v4269_v14 = vld [vmem:[%s6752_s3 + $0x3f4] ss:$8 sps:$4 sm:$0xff]  }
  0xd2   : > { %2243 = vmatpush1.bf16.msra.mxu1 %v4216_v17  ;;  %v6878_v17 = vmov 0 }
  0xd3   : > { %2629 = vmatpush1.bf16.msra.mxu0 %v4219_v18  ;;  %2244 = vmatprep.subr.bf16.mxu1 %v4224_v19  ;;  %v5317_v18 = vpop.permute.xlu1 %339  ;;  %v5319_v19 = vpop.permute.xlu0 %336 }
  0xd4   : > { %3516 = vmatmul.mubr.msk.bf16.gmra.mrb[16].mxu1 %vm3515_vm12, %v6758_v45  ;;  %2630 = vmatprep.subr.bf16.mxu0 %v4227_v20  ;;  %vm3521_vm12 = vmpackc.low %vm476_vm7, %vm468_vm6  ;;  %vm496_vm6 = vcmp.eq.s32.totalorder %v4832_v40, %v5128_v34 }
  0xd5   : > { %3644 = vmatmul.mubr.msk.bf16.gmra.mrb[16].mxu0 %vm3643_vm15, %v6758_v45  ;;  %3518 = vmatprep.mubr.msk.bf16.mxu1 %vm3517_vm0, %v6758_v45  ;;  %vm475_vm15 = vcmp.eq.s32.totalorder %v4822_v36, %v5086_v25  ;;  %vm471_vm0 = vcmp.eq.s32.totalorder %v4837_v42, %v5088_v26  ;;  %vm3653_vm9 = vmpackc.low %vm496_vm6, %vm488_vm5  ;;  %vm507_vm5 = vcmp.eq.s32.totalorder %v4822_v36, %v5172_v53 }
  0xd6   : > { %3646 = vmatprep.mubr.msk.bf16.mxu0 %vm3645_vm1, %v6758_v45  ;;  %2245 = vmatpush1.bf16.msra.mxu1 %v4222_v21  ;;  %vm479_vm1 = vcmp.eq.s32.totalorder %v4837_v42, %v5086_v25  ;;  %vm3523_vm4 = vmpackc.low %vm475_vm15, %vm467_vm14  ;;  %vm500_vm14 = vcmp.eq.s32.totalorder %v4829_v39, %v5174_v54  ;;  %vm508_vm15 = vcmp.eq.s32.totalorder %v4829_v39, %v5172_v53  ;;  %v4264_v21 = vld [vmem:[%s6752_s3 + $0x1f0] ss:$8 sps:$4 sm:$0xff]  }
  0xd7   : > { %2631 = vmatpush1.bf16.msra.mxu0 %v4225_v22  ;;  %2246 = vmatprep.subr.bf16.mxu1 %v4230_v23  ;;  %vm3651_vm7 = vmpackc.low %vm479_vm1, %vm471_vm0  ;;  %vm504_vm1 = vcmp.eq.s32.totalorder %v4832_v40, %v5174_v54  ;;  %v5340_v22 = vadd.s32 768, %v4822_v36  ;;  %v6889_v23 = vmov 0 }
  0xd8   : > { %2632 = vmatprep.subr.bf16.mxu0 %v4233_v24  ;;  %vm5261_vm6 = vmpackc.low %vm508_vm15, %vm500_vm14  ;;  %vm528_vm14 = vcmp.eq.s32.totalorder %v4832_v40, %v5219_v0  ;;  %v4267_v24 = vld [vmem:[%s6752_s3 + $0x3f0] ss:$8 sps:$4 sm:$0xff]  }
  0xda   : > { %2247 = vmatpush1.bf16.msra.mxu1 %v4228_v27  ;;  %v6902_v27 = vmov 0 }
  0xdb   : > { %2633 = vmatpush1.bf16.msra.mxu0 %v4231_v28  ;;  %2248 = vmatprep.subr.bf16.mxu1 %v4236_v29  ;;  %v6780_v28 = vmov 0  ;;  %v6782_v29 = vmov 0 }
  0xdc   : > { %3520 = vmatmul.mubr.msk.bf16.gmra.mrb[20].mxu1 %vm3519_vm8, %v6758_v45  ;;  %2634 = vmatprep.subr.bf16.mxu0 %v4239_v30  ;;  %vm3525_vm8 = vmpackc.low %vm492_vm3, %vm484_vm2  ;;  %vm512_vm2 = vcmp.eq.s32.totalorder %v4832_v40, %v5172_v53  ;;  %v6959_v30 = vmov 0 }
  0xdd   : > { %3648 = vmatmul.mubr.msk.bf16.gmra.mrb[20].mxu0 %vm3647_vm11, %v6758_v45  ;;  %3522 = vmatprep.mubr.msk.bf16.mxu1 %vm3521_vm12, %v6758_v45  ;;  %vm491_vm11 = vcmp.eq.s32.totalorder %v4822_v36, %v5128_v34  ;;  %vm487_vm12 = vcmp.eq.s32.totalorder %v4837_v42, %v5130_v44 }
  0xde   : > { %3650 = vmatprep.mubr.msk.bf16.mxu0 %vm3649_vm13, %v6758_v45  ;;  %2249 = vmatpush1.bf16.msra.mxu1 %v4234_v31  ;;  %vm495_vm13 = vcmp.eq.s32.totalorder %v4837_v42, %v5128_v34  ;;  %vm5236_vm0 = vmpackc.low %vm491_vm11, %vm483_vm10  ;;  %vm516_vm10 = vcmp.eq.s32.totalorder %v4829_v39, %v5221_v1  ;;  %vm524_vm11 = vcmp.eq.s32.totalorder %v4829_v39, %v5219_v0  ;;  %v6788_v31 = vmov 0 }
  0xdf   : > { %2635 = vmatpush1.bf16.msra.mxu0 %v4237_v32  ;;  %2250 = vmatprep.subr.bf16.mxu1 %v4242_v33  ;;  %vm5247_vm3 = vmpackc.low %vm495_vm13, %vm487_vm12  ;;  %vm520_vm13 = vcmp.eq.s32.totalorder %v4832_v40, %v5221_v1  ;;  %v6797_v33 = vmov 0  ;;  %v6909_v32 = vmov 0 }
  0xe0   : > { %2636 = vmatprep.subr.bf16.mxu0 %v4245_v46  ;;  %v6805_v46 = vmov 0 }
  0xe2   : > { %2251 = vmatpush1.bf16.msra.mxu1 %v4240_v47  ;;  %v5505_v47 = vpop.permute.xlu1 %345 }
  0xe3   : > { %2637 = vmatpush1.bf16.msra.mxu0 %v4243_v48  ;;  %2252 = vmatprep.subr.bf16.mxu1 %v4248_v49  ;;  %v5507_v48 = vpop.permute.xlu0 %342  ;;  %v6809_v49 = vmov 0 }
  0xe4   : > { %3524 = vmatmul.mubr.msk.bf16.gmra.mrb[24].mxu1 %vm3523_vm4, %v6758_v45  ;;  %2638 = vmatprep.subr.bf16.mxu0 %v4251_v52  ;;  %vm499_vm4 = vcmp.eq.s32.totalorder %v4822_v36, %v5174_v54  ;;  %v6811_v52 = vmov 0 }
  0xe5   : > { %3652 = vmatmul.mubr.msk.bf16.gmra.mrb[24].mxu0 %vm3651_vm7, %v6758_v45  ;;  %3526 = vmatprep.mubr.msk.bf16.mxu1 %vm3525_vm8, %v6758_v45  ;;  %vm503_vm7 = vcmp.eq.s32.totalorder %v4837_v42, %v5174_v54  ;;  %vm511_vm8 = vcmp.eq.s32.totalorder %v4837_v42, %v5172_v53  ;;  %vm5309_vm12 = vmpackc.low %vm507_vm5, %vm499_vm4  ;;  %vm386_vm4 = vcmp.eq.s32.totalorder %v5273_v11, %v4834_v41 }
  0xe6   : > { %3654 = vmatprep.mubr.msk.bf16.mxu0 %vm3653_vm9, %v6758_v45  ;;  %2253 = vmatpush1.bf16.msra.mxu1 %v4246_v55  ;;  %vm3657_vm9 = vmpackc.low %vm512_vm2, %vm504_vm1  ;;  %vm382_vm1 = vcmp.eq.s32.totalorder %v5259_v8, %v4834_v41  ;;  %v6822_v55 = vmov 0 }
  0xe7   : > { %2639 = vmatpush1.bf16.msra.mxu0 %v4249_v56  ;;  %2254 = vmatprep.subr.bf16.mxu1 %v4254_v57  ;;  %vm5328_vm15 = vmpackc.low %vm511_vm8, %vm503_vm7  ;;  %vm515_vm7 = vcmp.eq.s32.totalorder %v4822_v36, %v5221_v1  ;;  %vm523_vm8 = vcmp.eq.s32.totalorder %v4822_v36, %v5219_v0  ;;  %v6829_v57 = vmov 0  ;;  %v6918_v56 = vmov 0 }
  0xe8   : > { %2640 = vmatprep.subr.bf16.mxu0 %v4257_v58  ;;  %vm5348_vm2 = vmpackc.low %vm524_vm11, %vm516_vm10  ;;  %vm519_vm11 = vcmp.eq.s32.totalorder %v4837_v42, %v5221_v1 }
  0xea   : > { %2255 = vmatpush1.bf16.msra.mxu1 %v4252_v61 }
  0xeb   : > { %2641 = vmatpush1.bf16.msra.mxu0 %v4255_v62  ;;  %2256 = vmatprep.subr.bf16.mxu1 %v4260_v63  ;;  %v6838_v62 = vmov 0  ;;  %v5665_v63 = vpop.permute.xlu1 %351 }
  0xec   : > { %3528 = vmatmul.mubr.msk.bf16.gmra.mrb[28].mxu1 %vm5236_vm0, %v6758_v45  ;;  %2642 = vmatprep.subr.bf16.mxu0 %v4263_v2  ;;  %vm374_vm0 = vcmp.eq.s32.totalorder %v5259_v8, %v4826_v38  ;;  %v5667_v2 = vpop.permute.xlu0 %348 }
  0xed   : > { %3656 = vmatmul.mubr.msk.bf16.gmra.mrb[28].mxu0 %vm5247_vm3, %v6758_v45  ;;  %3530 = vmatprep.mubr.msk.bf16.mxu1 %vm5261_vm6, %v6758_v45  ;;  %vm378_vm3 = vcmp.eq.s32.totalorder %v5273_v11, %v4826_v38  ;;  %vm5367_vm6 = vmpackc.low %vm528_vm14, %vm520_vm13  ;;  %vm532_vm14 = vcmp.eq.s32.totalorder %v4829_v39, %v5319_v19 }
  0xee   : > { %3658 = vmatprep.mubr.msk.bf16.mxu0 %vm3657_vm9, %v6758_v45  ;;  %2257 = vmatpush1.bf16.msra.mxu1 %v4258_v7  ;;  %vm5393_vm9 = vmpackc.low %vm382_vm1, %vm374_vm0  ;;  %vm377_vm1 = vcmp.eq.s32.totalorder %v5340_v22, %v4826_v38  ;;  %v6862_v7 = vmov 0 }
  0xef   : > { %2643 = vmatpush1.bf16.msra.mxu0 %v4261_v10  ;;  %2258 = vmatprep.subr.bf16.mxu1 %v4266_v12  ;;  %v6781_v28 = vsel %vm5393_vm9, 4294967295, %v6780_v28  ;;  %vm5407_vm5 = vmpackc.low %vm386_vm4, %vm378_vm3  ;;  %vm6786_vm3 = vcmp.eq.s32.totalorder %v5279_v13, %v4826_v38  ;;  %vm6787_vm4 = vcmp.eq.s32.totalorder %v5279_v13, %v4834_v41  ;;  %v6869_v10 = vmov 0  ;;  %v5825_v20 = vpop.permute.xlu1 %357 }
  0xf0   : > { %2644 = vmatprep.subr.bf16.mxu0 %v4269_v14  ;;  %v6783_v29 = vsel %vm5407_vm5, 4294967295, %v6782_v29  ;;  %vm5421_vm13 = vmpackc.low %vm523_vm8, %vm515_vm7  ;;  %vm6793_vm8 = vcmp.eq.s32.totalorder %v4829_v39, %v5317_v18  ;;  %vm6817_vm5 = vcmp.eq.s32.totalorder %v5259_v8, %v4887_v50  ;;  %v6942_v12 = vmov 0 }
  0xf1   : > { %vm5431_vm0 = vmpackc.low %vm6787_vm4, %vm6786_vm3  ;;  %vm6790_vm3 = vcmp.eq.s32.totalorder %v4837_v42, %v5219_v0  ;;  %v7001_v14 = vmov 0 }
  0xf2   : > { %2259 = vmatpush1.bf16.msra.mxu1 %v4264_v21  ;;  %v6789_v31 = vsel %vm5431_vm0, 4294967295, %v6788_v31  ;;  %vm5450_vm4 = vmpackc.low %vm6790_vm3, %vm519_vm11  ;;  %vm389_vm11 = vcmp.eq.s32.totalorder %v5279_v13, %v4824_v37  ;;  %vm397_vm3 = vcmp.eq.s32.totalorder %v5279_v13, %v4839_v43  ;;  %vm401_vm0 = vcmp.eq.s32.totalorder %v5340_v22, %v4839_v43  ;;  %v5827_v21 = vpop.permute.xlu0 %354 }
  0xf3   : > { %2645 = vmatpush1.bf16.msra.mxu0 %v4267_v24  ;;  %vm5460_vm7 = vmpackc.low %vm6793_vm8, %vm532_vm14  ;;  %vm6799_vm14 = vcmp.eq.s32.totalorder %v4832_v40, %v5319_v19  ;;  %v6891_v24 = vmov 0  ;;  %v5985_v58 = vpop.permute.xlu1 %363 }
  0xf4   : > { %3532 = vmatmul.mubr.msk.bf16.gmra.mrb[32].mxu1 %vm5309_vm12, %v6758_v45  ;;  %vm6796_vm12 = vcmp.eq.s32.totalorder %v5340_v22, %v4834_v41 }
  0xf5   : > { %vm5467_vm10 = vmpackc.low %vm6796_vm12, %vm377_vm1  ;;  %3660 = vmatmul.mubr.msk.bf16.gmra.mrb[32].mxu0 %vm5328_vm15, %v6758_v45  ;;  %3534 = vmatprep.mubr.msk.bf16.mxu1 %vm5348_vm2, %v6758_v45  ;;  %vm6800_vm1 = vcmp.eq.s32.totalorder %v4832_v40, %v5317_v18  ;;  %vm6803_vm12 = vcmp.eq.s32.totalorder %v5259_v8, %v4824_v37  ;;  %vm6804_vm15 = vcmp.eq.s32.totalorder %v5259_v8, %v4839_v43 }
  0xf6   : > { %v6798_v33 = vsel %vm5467_vm10, 4294967295, %v6797_v33  ;;  %vm5487_vm8 = vmpackc.low %vm6800_vm1, %vm6799_vm14  ;;  %3662 = vmatprep.mubr.msk.bf16.mxu0 %vm5367_vm6, %v6758_v45  ;;  %vm6807_vm14 = vcmp.eq.s32.totalorder %v5273_v11, %v4824_v37  ;;  %vm6808_vm1 = vcmp.eq.s32.totalorder %v5273_v11, %v4839_v43  ;;  %v6814_v43 = vmov 0  ;;  %v5987_v61 = vpop.permute.xlu0 %360 }
  0xf7   : > { %vm5497_vm10 = vmpackc.low %vm6804_vm15, %vm6803_vm12  ;;  %vm543_vm15 = vcmp.eq.s32.totalorder %v4837_v42, %v5317_v18  ;;  %vm548_vm6 = vcmp.eq.s32.totalorder %v4829_v39, %v5507_v48  ;;  %v6145_v38 = vpop.permute.xlu1 %369 }
  0xf8   : > { %v6806_v46 = vsel %vm5497_vm10, 4294967295, %v6805_v46  ;;  %vm5518_vm12 = vmpackc.low %vm6808_vm1, %vm6807_vm14  ;;  %vm6824_vm14 = vcmp.eq.s32.totalorder %v4822_v36, %v5319_v19 }
  0xf9   : > { %v6810_v49 = vsel %vm5518_vm12, 4294967295, %v6809_v49  ;;  %vm5526_vm10 = vmpackc.low %vm397_vm3, %vm389_vm11  ;;  %vm539_vm11 = vcmp.eq.s32.totalorder %v4822_v36, %v5317_v18  ;;  %vm6813_vm3 = vcmp.eq.s32.totalorder %v5340_v22, %v4824_v37  ;;  %v6818_v37 = vmov 0 }
  0xfa   : > { %v6812_v52 = vsel %vm5526_vm10, 4294967295, %v6811_v52  ;;  %vm5545_vm2 = vmpackc.low %vm401_vm0, %vm6813_vm3  ;;  %vm556_vm0 = vcmp.eq.s32.totalorder %v4829_v39, %v5505_v47  ;;  %vm6816_vm3 = vcmp.eq.s32.totalorder %v5259_v8, %v4889_v51  ;;  %vm6820_vm10 = vcmp.eq.s32.totalorder %v5273_v11, %v4889_v51  ;;  %v6147_v41 = vpop.permute.xlu0 %366 }
  0xfb   : > { %v6815_v43 = vsel %vm5545_vm2, 4294967295, %v6814_v43  ;;  %vm5567_vm2 = vmpackc.low %vm6817_vm5, %vm6816_vm3  ;;  %vm6821_vm12 = vcmp.eq.s32.totalorder %v5273_v11, %v4887_v50  ;;  %vm430_vm3 = vcmp.eq.s32.totalorder %v5259_v8, %v4933_v59 }
  0xfc   : > { %v6819_v37 = vsel %vm5567_vm2, 4294967295, %v6818_v37  ;;  %vm5581_vm9 = vmpackc.low %vm6821_vm12, %vm6820_vm10  ;;  %vm6827_vm2 = vcmp.eq.s32.totalorder %v5279_v13, %v4889_v51  ;;  %vm6828_vm10 = vcmp.eq.s32.totalorder %v5279_v13, %v4887_v50  ;;  %3536 = vmatmul.mubr.msk.bf16.gmra.mrb[36].mxu1 %vm5421_vm13, %v6758_v45  ;;  %vm421_vm13 = vcmp.eq.s32.totalorder %v5279_v13, %v4935_v60 }
  0xfd   : > { %v6823_v55 = vsel %vm5581_vm9, 4294967295, %v6822_v55  ;;  %vm5592_vm1 = vmpackc.low %vm539_vm11, %vm6824_vm14  ;;  %vm6831_vm14 = vcmp.eq.s32.totalorder %v4837_v42, %v5319_v19  ;;  %vm6837_vm9 = vcmp.eq.s32.totalorder %v5340_v22, %v4887_v50  ;;  %3664 = vmatmul.mubr.msk.bf16.gmra.mrb[36].mxu0 %vm5450_vm4, %v6758_v45  ;;  %3538 = vmatprep.mubr.msk.bf16.mxu1 %vm5460_vm7, %v6758_v45  ;;  %vm433_vm4 = vcmp.eq.s32.totalorder %v5340_v22, %v4933_v59 }
  0xfe   : > { %vm5602_vm12 = vmpackc.low %vm6828_vm10, %vm6827_vm2  ;;  %vm6836_vm10 = vcmp.eq.s32.totalorder %v5340_v22, %v4889_v51  ;;  %v6845_v51 = vmov 0  ;;  %3666 = vmatprep.mubr.msk.bf16.mxu0 %vm5487_vm8, %v6758_v45  ;;  %vm564_vm8 = vcmp.eq.s32.totalorder %v4829_v39, %v5667_v2  ;;  %v6929_v50 = vmov 0 }
  0xff   : > { %v6830_v57 = vsel %vm5602_vm12, 4294967295, %v6829_v57  ;;  %vm5616_vm11 = vmpackc.low %vm543_vm15, %vm6831_vm14  ;;  %vm429_vm15 = vcmp.eq.s32.totalorder %v5279_v13, %v4933_v59  ;;  %vm6844_vm14 = vcmp.eq.s32.totalorder %v5259_v8, %v4935_v60 }
 0x100   : > { %vm5620_vm2 = vmpackc.low %vm556_vm0, %vm548_vm6  ;;  %vm6841_vm6 = vcmp.eq.s32.totalorder %v4832_v40, %v5505_v47 }
 0x101   : > { %vm5630_vm5 = vmpackc.low %vm6837_vm9, %vm6836_vm10  ;;  %vm6840_vm9 = vcmp.eq.s32.totalorder %v4832_v40, %v5507_v48 }
 0x102   : > { %v6839_v62 = vsel %vm5630_vm5, 4294967295, %v6838_v62  ;;  %vm5650_vm0 = vmpackc.low %vm6841_vm6, %vm6840_vm9  ;;  %vm6848_vm9 = vcmp.eq.s32.totalorder %v5273_v11, %v4933_v59  ;;  %v6854_v59 = vmov 0  ;;  %vm6857_vm5 = vcmp.eq.s32.totalorder %v5259_v8, %v4984_v5 }
 0x103   : > { %vm5657_vm10 = vmpackc.low %vm430_vm3, %vm6844_vm14  ;;  %vm6847_vm3 = vcmp.eq.s32.totalorder %v5273_v11, %v4935_v60  ;;  %vm559_vm14 = vcmp.eq.s32.totalorder %v4837_v42, %v5505_v47 }
 0x104   : > { %v6846_v51 = vsel %vm5657_vm10, 4294967295, %v6845_v51  ;;  %vm5678_vm6 = vmpackc.low %vm6848_vm9, %vm6847_vm3  ;;  %vm6864_vm3 = vcmp.eq.s32.totalorder %v4822_v36, %v5507_v48  ;;  %3540 = vmatmul.mubr.msk.bf16.gmra.mrb[40].mxu1 %vm5592_vm1, %v6758_v45  ;;  %vm453_vm1 = vcmp.eq.s32.totalorder %v5279_v13, %v5037_v16 }
 0x105   : > { %v6850_v3 = vsel %vm5678_vm6, 4294967295, %v6849_v3  ;;  %vm5686_vm10 = vmpackc.low %vm429_vm15, %vm421_vm13  ;;  %vm555_vm13 = vcmp.eq.s32.totalorder %v4822_v36, %v5505_v47  ;;  %vm6853_vm15 = vcmp.eq.s32.totalorder %v5340_v22, %v4935_v60  ;;  %v6858_v60 = vmov 0  ;;  %3668 = vmatmul.mubr.msk.bf16.gmra.mrb[40].mxu0 %vm5616_vm11, %v6758_v45  ;;  %3542 = vmatprep.mubr.msk.bf16.mxu1 %vm5620_vm2, %v6758_v45 }
 0x106   : > { %v6852_v4 = vsel %vm5686_vm10, 4294967295, %v6851_v4  ;;  %vm5705_vm7 = vmpackc.low %vm433_vm4, %vm6853_vm15  ;;  %vm572_vm4 = vcmp.eq.s32.totalorder %v4829_v39, %v5665_v63  ;;  %vm6856_vm15 = vcmp.eq.s32.totalorder %v5259_v8, %v4986_v6  ;;  %vm6860_vm10 = vcmp.eq.s32.totalorder %v5273_v11, %v4986_v6  ;;  %3670 = vmatprep.mubr.msk.bf16.mxu0 %vm5650_vm0, %v6758_v45 }
 0x107   : > { %v6855_v59 = vsel %vm5705_vm7, 4294967295, %v6854_v59  ;;  %vm5727_vm7 = vmpackc.low %vm6857_vm5, %vm6856_vm15  ;;  %vm6861_vm6 = vcmp.eq.s32.totalorder %v5273_v11, %v4984_v5  ;;  %vm462_vm15 = vcmp.eq.s32.totalorder %v5259_v8, %v5035_v15  ;;  %vm465_vm2 = vcmp.eq.s32.totalorder %v5340_v22, %v5035_v15 }
 0x108   : > { %v6859_v60 = vsel %vm5727_vm7, 4294967295, %v6858_v60  ;;  %vm5741_vm12 = vmpackc.low %vm6861_vm6, %vm6860_vm10  ;;  %vm6867_vm7 = vcmp.eq.s32.totalorder %v5279_v13, %v4986_v6  ;;  %vm6868_vm10 = vcmp.eq.s32.totalorder %v5279_v13, %v4984_v5  ;;  %vm580_vm0 = vcmp.eq.s32.totalorder %v4829_v39, %v5827_v21 }
 0x109   : > { %v6863_v7 = vsel %vm5741_vm12, 4294967295, %v6862_v7  ;;  %vm5752_vm9 = vmpackc.low %vm555_vm13, %vm6864_vm3  ;;  %vm6871_vm3 = vcmp.eq.s32.totalorder %v4837_v42, %v5507_v48  ;;  %vm6877_vm12 = vcmp.eq.s32.totalorder %v5340_v22, %v4984_v5  ;;  %v6950_v5 = vmov 0 }
 0x10a   : > { %vm5762_vm6 = vmpackc.low %vm6868_vm10, %vm6867_vm7  ;;  %vm6876_vm10 = vcmp.eq.s32.totalorder %v5340_v22, %v4986_v6  ;;  %v6885_v6 = vmov 0 }
 0x10b   : > { %v6870_v10 = vsel %vm5762_vm6, 4294967295, %v6869_v10  ;;  %vm5776_vm13 = vmpackc.low %vm559_vm14, %vm6871_vm3  ;;  %vm461_vm14 = vcmp.eq.s32.totalorder %v5279_v13, %v5035_v15  ;;  %vm6884_vm3 = vcmp.eq.s32.totalorder %v5259_v8, %v5037_v16 }
 0x10c   : > { %vm5780_vm7 = vmpackc.low %vm572_vm4, %vm564_vm8  ;;  %vm6881_vm8 = vcmp.eq.s32.totalorder %v4832_v40, %v5665_v63  ;;  %3544 = vmatmul.mubr.msk.bf16.gmra.mrb[44].mxu1 %vm5752_vm9, %v6758_v45  ;;  %vm485_vm9 = vcmp.eq.s32.totalorder %v5279_v13, %v5130_v44 }
 0x10d   : > { %vm5790_vm5 = vmpackc.low %vm6877_vm12, %vm6876_vm10  ;;  %vm6880_vm12 = vcmp.eq.s32.totalorder %v4832_v40, %v5667_v2  ;;  %3672 = vmatmul.mubr.msk.bf16.gmra.mrb[44].mxu0 %vm5776_vm13, %v6758_v45  ;;  %3546 = vmatprep.mubr.msk.bf16.mxu1 %vm5780_vm7, %v6758_v45  ;;  %vm497_vm7 = vcmp.eq.s32.totalorder %v5340_v22, %v5128_v34 }
 0x10e   : > { %v6879_v17 = vsel %vm5790_vm5, 4294967295, %v6878_v17  ;;  %vm5810_vm4 = vmpackc.low %vm6881_vm8, %vm6880_vm12  ;;  %vm6888_vm12 = vcmp.eq.s32.totalorder %v5273_v11, %v5035_v15  ;;  %v6894_v15 = vmov 0  ;;  %vm6897_vm5 = vcmp.eq.s32.totalorder %v5259_v8, %v5086_v25 }
 0x10f   : > { %vm5817_vm10 = vmpackc.low %vm462_vm15, %vm6884_vm3  ;;  %vm6887_vm15 = vcmp.eq.s32.totalorder %v5273_v11, %v5037_v16  ;;  %vm575_vm3 = vcmp.eq.s32.totalorder %v4837_v42, %v5665_v63  ;;  %3674 = vmatprep.mubr.msk.bf16.mxu0 %vm5810_vm4, %v6758_v45  ;;  %vm596_vm4 = vcmp.eq.s32.totalorder %v4829_v39, %v5987_v61 }
 0x110   : > { %v6886_v6 = vsel %vm5817_vm10, 4294967295, %v6885_v6  ;;  %vm5838_vm8 = vmpackc.low %vm6888_vm12, %vm6887_vm15  ;;  %vm6904_vm15 = vcmp.eq.s32.totalorder %v4822_v36, %v5667_v2 }
 0x111   : > { %v6890_v23 = vsel %vm5838_vm8, 4294967295, %v6889_v23  ;;  %vm5846_vm10 = vmpackc.low %vm461_vm14, %vm453_vm1  ;;  %vm571_vm1 = vcmp.eq.s32.totalorder %v4822_v36, %v5665_v63  ;;  %vm6893_vm14 = vcmp.eq.s32.totalorder %v5340_v22, %v5037_v16  ;;  %v6898_v16 = vmov 0 }
 0x112   : > { %v6892_v24 = vsel %vm5846_vm10, 4294967295, %v6891_v24  ;;  %vm5865_vm11 = vmpackc.low %vm465_vm2, %vm6893_vm14  ;;  %vm588_vm2 = vcmp.eq.s32.totalorder %v4829_v39, %v5825_v20  ;;  %vm6896_vm14 = vcmp.eq.s32.totalorder %v5259_v8, %v5088_v26  ;;  %vm6900_vm10 = vcmp.eq.s32.totalorder %v5273_v11, %v5088_v26 }
 0x113   : > { %v6895_v15 = vsel %vm5865_vm11, 4294967295, %v6894_v15  ;;  %vm5887_vm11 = vmpackc.low %vm6897_vm5, %vm6896_vm14  ;;  %vm6901_vm8 = vcmp.eq.s32.totalorder %v5273_v11, %v5086_v25  ;;  %vm494_vm14 = vcmp.eq.s32.totalorder %v5259_v8, %v5128_v34 }
 0x114   : > { %v6899_v16 = vsel %vm5887_vm11, 4294967295, %v6898_v16  ;;  %vm5901_vm6 = vmpackc.low %vm6901_vm8, %vm6900_vm10  ;;  %vm6907_vm11 = vcmp.eq.s32.totalorder %v5279_v13, %v5088_v26  ;;  %vm6908_vm10 = vcmp.eq.s32.totalorder %v5279_v13, %v5086_v25 }
 0x115   : > { %v6903_v27 = vsel %vm5901_vm6, 4294967295, %v6902_v27  ;;  %vm5912_vm12 = vmpackc.low %vm571_vm1, %vm6904_vm15  ;;  %vm6911_vm15 = vcmp.eq.s32.totalorder %v4837_v42, %v5667_v2  ;;  %vm6917_vm6 = vcmp.eq.s32.totalorder %v5340_v22, %v5086_v25  ;;  %v6974_v25 = vmov 0 }
 0x116   : > { %vm5922_vm8 = vmpackc.low %vm6908_vm10, %vm6907_vm11  ;;  %vm6916_vm10 = vcmp.eq.s32.totalorder %v5340_v22, %v5088_v26  ;;  %v6925_v26 = vmov 0  ;;  %3548 = vmatmul.mubr.msk.bf16.gmra.mrb[48].mxu1 %vm5912_vm12, %v6758_v45  ;;  %vm517_vm12 = vcmp.eq.s32.totalorder %v5279_v13, %v5221_v1 }
 0x117   : > { %v6910_v32 = vsel %vm5922_vm8, 4294967295, %v6909_v32  ;;  %vm5936_vm1 = vmpackc.low %vm575_vm3, %vm6911_vm15  ;;  %vm493_vm3 = vcmp.eq.s32.totalorder %v5279_v13, %v5128_v34  ;;  %vm6924_vm15 = vcmp.eq.s32.totalorder %v5259_v8, %v5130_v44 }
 0x118   : > { %vm5940_vm11 = vmpackc.low %vm588_vm2, %vm580_vm0  ;;  %vm6921_vm0 = vcmp.eq.s32.totalorder %v4832_v40, %v5825_v20  ;;  %3676 = vmatmul.mubr.msk.bf16.gmra.mrb[48].mxu0 %vm5936_vm1, %v6758_v45  ;;  %vm542_vm1 = vcmp.eq.s32.totalorder %v5259_v8, %v5317_v18 }
 0x119   : > { %vm5950_vm5 = vmpackc.low %vm6917_vm6, %vm6916_vm10  ;;  %vm6920_vm6 = vcmp.eq.s32.totalorder %v4832_v40, %v5827_v21  ;;  %3550 = vmatprep.mubr.msk.bf16.mxu1 %vm5940_vm11, %v6758_v45  ;;  %vm529_vm11 = vcmp.eq.s32.totalorder %v5340_v22, %v5219_v0 }
 0x11a   : > { %v6919_v56 = vsel %vm5950_vm5, 4294967295, %v6918_v56  ;;  %vm5970_vm2 = vmpackc.low %vm6921_vm0, %vm6920_vm6  ;;  %vm6928_vm6 = vcmp.eq.s32.totalorder %v5273_v11, %v5128_v34  ;;  %v6934_v34 = vmov 0  ;;  %vm6937_vm5 = vcmp.eq.s32.totalorder %v5259_v8, %v5172_v53 }
 0x11b   : > { %vm5977_vm10 = vmpackc.low %vm494_vm14, %vm6924_vm15  ;;  %vm6927_vm14 = vcmp.eq.s32.totalorder %v5273_v11, %v5130_v44  ;;  %vm591_vm15 = vcmp.eq.s32.totalorder %v4837_v42, %v5825_v20  ;;  %3678 = vmatprep.mubr.msk.bf16.mxu0 %vm5970_vm2, %v6758_v45  ;;  %v6979_v45 = vmov 0 }
 0x11c   : > { %v6926_v26 = vsel %vm5977_vm10, 4294967295, %v6925_v26  ;;  %vm5998_vm0 = vmpackc.low %vm6928_vm6, %vm6927_vm14  ;;  %vm6945_vm14 = vcmp.eq.s32.totalorder %v4822_v36, %v5827_v21 }
 0x11d   : > { %v6930_v50 = vsel %vm5998_vm0, 4294967295, %v6929_v50  ;;  %vm6006_vm10 = vmpackc.low %vm493_vm3, %vm485_vm9  ;;  %vm587_vm9 = vcmp.eq.s32.totalorder %v4822_v36, %v5825_v20  ;;  %vm6933_vm3 = vcmp.eq.s32.totalorder %v5340_v22, %v5130_v44  ;;  %v6938_v44 = vmov 0 }
 0x11e   : > { %v6932_v9 = vsel %vm6006_vm10, 4294967295, %v6931_v9  ;;  %vm6025_vm13 = vmpackc.low %vm497_vm7, %vm6933_vm3  ;;  %vm604_vm7 = vcmp.eq.s32.totalorder %v4829_v39, %v5985_v58  ;;  %vm6936_vm3 = vcmp.eq.s32.totalorder %v5259_v8, %v5174_v54  ;;  %vm6940_vm10 = vcmp.eq.s32.totalorder %v5273_v11, %v5174_v54 }
 0x11f   : > { %v6935_v34 = vsel %vm6025_vm13, 4294967295, %v6934_v34  ;;  %vm6047_vm13 = vmpackc.low %vm6937_vm5, %vm6936_vm3  ;;  %vm6941_vm0 = vcmp.eq.s32.totalorder %v5273_v11, %v5172_v53  ;;  %vm526_vm3 = vcmp.eq.s32.totalorder %v5259_v8, %v5219_v0 }
 0x120   : > { %v6939_v44 = vsel %vm6047_vm13, 4294967295, %v6938_v44  ;;  %vm6061_vm8 = vmpackc.low %vm6941_vm0, %vm6940_vm10  ;;  %vm6948_vm13 = vcmp.eq.s32.totalorder %v5279_v13, %v5174_v54  ;;  %vm6949_vm10 = vcmp.eq.s32.totalorder %v5279_v13, %v5172_v53 }
 0x121   : > { %v6943_v12 = vsel %vm6061_vm8, 4294967295, %v6942_v12  ;;  %vm6072_vm6 = vmpackc.low %vm587_vm9, %vm6945_vm14  ;;  %vm6952_vm14 = vcmp.eq.s32.totalorder %v4837_v42, %v5827_v21  ;;  %vm6958_vm8 = vcmp.eq.s32.totalorder %v5340_v22, %v5172_v53  ;;  %v6963_v53 = vmov 0 }
 0x122   : > { %6944 = vst [vmem:[#allocation8_spill] sm:$0xff] %v6943_v12  ;;  %vm6082_vm0 = vmpackc.low %vm6949_vm10, %vm6948_vm13  ;;  %vm6957_vm10 = vcmp.eq.s32.totalorder %v5340_v22, %v5174_v54  ;;  %v6966_v54 = vmov 0  ;;  %v7014_v12 = vmov 0 }
 0x123   : > { %v6951_v5 = vsel %vm6082_vm0, 4294967295, %v6950_v5  ;;  %vm6096_vm9 = vmpackc.low %vm591_vm15, %vm6952_vm14  ;;  %vm6965_vm14 = vcmp.eq.s32.totalorder %v5259_v8, %v5221_v1  ;;  %vm6985_vm15 = vcmp.eq.s32.totalorder %v4822_v36, %v5987_v61 }
 0x124   : > { %vm6100_vm13 = vmpackc.low %vm604_vm7, %vm596_vm4  ;;  %vm6962_vm4 = vcmp.eq.s32.totalorder %v4832_v40, %v5985_v58 }
 0x125   : > { %vm6110_vm5 = vmpackc.low %vm6958_vm8, %vm6957_vm10  ;;  %vm6961_vm8 = vcmp.eq.s32.totalorder %v4832_v40, %v5987_v61 }
 0x126   : > { %v6960_v30 = vsel %vm6110_vm5, 4294967295, %v6959_v30  ;;  %vm6130_vm7 = vmpackc.low %vm6962_vm4, %vm6961_vm8  ;;  %vm6970_vm8 = vcmp.eq.s32.totalorder %v5273_v11, %v5219_v0  ;;  %vm6976_vm5 = vcmp.eq.s32.totalorder %v5340_v22, %v5221_v1 }
 0x127   : > { %v6964_v53 = vsel %vm6130_vm7, 4294967295, %v6963_v53  ;;  %vm6137_vm10 = vmpackc.low %vm526_vm3, %vm6965_vm14  ;;  %vm6969_vm3 = vcmp.eq.s32.totalorder %v5273_v11, %v5221_v1  ;;  %vm534_vm14 = vcmp.eq.s32.totalorder %v5259_v8, %v5319_v19  ;;  %v6982_v1 = vmov 0 }
 0x128   : > { %v6967_v54 = vsel %vm6137_vm10, 4294967295, %v6966_v54  ;;  %vm6158_vm4 = vmpackc.low %vm6970_vm8, %vm6969_vm3  ;;  %vm6973_vm3 = vcmp.eq.s32.totalorder %v5279_v13, %v5219_v0  ;;  %vm546_vm10 = vcmp.eq.s32.totalorder %v5273_v11, %v5317_v18  ;;  %v6977_v0 = vmov 0 }
 0x129   : > { %6968 = vst [vmem:[#allocation9_spill] sm:$0xff] %v6967_v54  ;;  %v6971_v54 = vmov 0  ;;  %vm6176_vm8 = vmpackc.low %vm6973_vm3, %vm517_vm12  ;;  %vm533_vm12 = vcmp.eq.s32.totalorder %v5279_v13, %v5319_v19  ;;  %vm541_vm3 = vcmp.eq.s32.totalorder %v5279_v13, %v5317_v18 }
 0x12a   : > { %v6972_v54 = vsel %vm6158_vm4, 4294967295, %v6971_v54  ;;  %v6975_v25 = vsel %vm6176_vm8, 4294967295, %v6974_v25  ;;  %vm538_vm4 = vcmp.eq.s32.totalorder %v5273_v11, %v5319_v19  ;;  %vm6191_vm0 = vmpackc.low %vm529_vm11, %vm6976_vm5  ;;  %vm537_vm5 = vcmp.eq.s32.totalorder %v5340_v22, %v5319_v19 }
 0x12b   : > { %v6978_v0 = vsel %vm6191_vm0, 4294967295, %v6977_v0  ;;  %vm6203_vm2 = vmpackc.low %vm542_vm1, %vm534_vm14  ;;  %vm545_vm11 = vcmp.eq.s32.totalorder %v5340_v22, %v5317_v18  ;;  %vm558_vm14 = vcmp.eq.s32.totalorder %v5259_v8, %v5505_v47  ;;  %v6987_v18 = vmov 0 }
 0x12c   : > { %v6980_v45 = vsel %vm6203_vm2, 4294967295, %v6979_v45  ;;  %vm6215_vm8 = vmpackc.low %vm546_vm10, %vm538_vm4  ;;  %vm6986_vm2 = vcmp.eq.s32.totalorder %v4822_v36, %v5985_v58  ;;  %v6989_v19 = vmov 0  ;;  %vm562_vm1 = vcmp.eq.s32.totalorder %v5273_v11, %v5505_v47 }
 0x12d   : > { %6981 = vst [vmem:[#allocation10_spill] sm:$0xff] %v6980_v45  ;;  %v6983_v1 = vsel %vm6215_vm8, 4294967295, %v6982_v1  ;;  %vm6229_vm0 = vmpackc.low %vm6986_vm2, %vm6985_vm15  ;;  %vm6993_vm15 = vcmp.eq.s32.totalorder %v4837_v42, %v5987_v61  ;;  %vm6994_vm2 = vcmp.eq.s32.totalorder %v4837_v42, %v5985_v58  ;;  %v6995_v45 = vmov 0 }
 0x12e   : > { %6984 = vst [vmem:[#allocation11_spill] sm:$0xff] %v6983_v1  ;;  %v6988_v18 = vsel %vm6229_vm0, 4294967295, %v6987_v18  ;;  %vm6233_vm10 = vmpackc.low %vm541_vm3, %vm533_vm12  ;;  %v6992_v1 = vmov 1.0|1.0   ;;  %vm6997_vm3 = vcmp.eq.s32.totalorder %v4829_v39, %v6147_v41  ;;  %vm6998_vm4 = vcmp.eq.s32.totalorder %v4829_v39, %v6145_v38 }
 0x12f   : > { %v6990_v19 = vsel %vm6233_vm10, 4294967295, %v6989_v19  ;;  %3552 = vmatmul.mubr.msk.bf16.gmra.mrb[52].mxu1 %vm6072_vm6, %v6992_v1  ;;  %vm6250_vm12 = vmpackc.low %vm6994_vm2, %vm6993_vm15  ;;  %vm549_vm15 = vcmp.eq.s32.totalorder %v5279_v13, %v5507_v48  ;;  %vm557_vm2 = vcmp.eq.s32.totalorder %v5279_v13, %v5505_v47  ;;  %3680 = vmatmul.mubr.msk.bf16.gmra.mrb[52].mxu0 %vm6096_vm9, %v6992_v1  ;;  %v7005_v39 = vmov 0 }
 0x130   : > { %6991 = vst [vmem:[#allocation12_spill] sm:$0xff] %v6990_v19  ;;  %v6996_v45 = vsel %vm6250_vm12, 4294967295, %v6995_v45  ;;  %vm6260_vm7 = vmpackc.low %vm6998_vm4, %vm6997_vm3  ;;  %v6999_v19 = vmov 0  ;;  %3554 = vmatprep.mubr.msk.bf16.mxu1 %vm6100_vm13, %v6992_v1  ;;  %vm7007_vm3 = vcmp.eq.s32.totalorder %v5259_v8, %v5507_v48  ;;  %vm553_vm9 = vcmp.eq.s32.totalorder %v5340_v22, %v5507_v48 }
 0x131   : > { %v7000_v19 = vsel %vm6260_vm7, 4294967295, %v6999_v19  ;;  %vm6264_vm6 = vmpackc.low %vm545_vm11, %vm537_vm5  ;;  %vm7003_vm5 = vcmp.eq.s32.totalorder %v4832_v40, %v6147_v41  ;;  %vm7004_vm11 = vcmp.eq.s32.totalorder %v4832_v40, %v6145_v38  ;;  %vm561_vm13 = vcmp.eq.s32.totalorder %v5340_v22, %v5505_v47 }
 0x132   : > { %v7002_v14 = vsel %vm6264_vm6, 4294967295, %v7001_v14  ;;  %vm6284_vm4 = vmpackc.low %vm7004_vm11, %vm7003_vm5  ;;  %vm7010_vm10 = vnez %v6964_v53  ;;  %vm7011_vm5 = vcmp.eq.s32.totalorder %v5273_v11, %v5507_v48  ;;  %v7012_v40 = vmov 0 }
 0x133   : > { %v7006_v39 = vsel %vm6284_vm4, 4294967295, %v7005_v39  ;;  %vm6291_vm6 = vmpackc.low %vm558_vm14, %vm7007_vm3  ;;  %3682 = vmatprep.mubr.msk.bf16.mxu0 %vm7010_vm10, %v6992_v1  ;;  %vm566_vm14 = vcmp.eq.s32.totalorder %v5259_v8, %v5667_v2  ;;  %vm574_vm3 = vcmp.eq.s32.totalorder %v5259_v8, %v5665_v63  ;;  %vm570_vm10 = vcmp.eq.s32.totalorder %v5273_v11, %v5667_v2 }
 0x134   : > { %v7009_v35 = vsel %vm6291_vm6, 4294967295, %v7008_v35  ;;  %vm6305_vm11 = vmpackc.low %vm562_vm1, %vm7011_vm5  ;;  %vm578_vm8 = vcmp.eq.s32.totalorder %v5273_v11, %v5665_v63  ;;  %vm611_vm1 = vcmp.eq.s32.totalorder %v4822_v36, %v6147_v41  ;;  %vm619_vm5 = vcmp.eq.s32.totalorder %v4822_v36, %v6145_v38 }
 0x135   : > { %v7013_v40 = vsel %vm6305_vm11, 4294967295, %v7012_v40  ;;  %vm6313_vm6 = vmpackc.low %vm557_vm2, %vm549_vm15  ;;  %v7016_v47 = vmov 0  ;;  %vm565_vm15 = vcmp.eq.s32.totalorder %v5279_v13, %v5667_v2  ;;  %vm573_vm2 = vcmp.eq.s32.totalorder %v5279_v13, %v5665_v63 }
 0x136   : > { %v7015_v12 = vsel %vm6313_vm6, 4294967295, %v7014_v12  ;;  %vm6325_vm11 = vmpackc.low %vm561_vm13, %vm553_vm9  ;;  %vm615_vm6 = vcmp.eq.s32.totalorder %v4837_v42, %v6147_v41  ;;  %vm623_vm4 = vcmp.eq.s32.totalorder %v4837_v42, %v6145_v38  ;;  %v7018_v48 = vmov 0 }
 0x137   : > { %v7017_v47 = vsel %vm6325_vm11, 4294967295, %v7016_v47  ;;  %vm6337_vm7 = vmpackc.low %vm574_vm3, %vm566_vm14  ;;  %vm569_vm9 = vcmp.eq.s32.totalorder %v5340_v22, %v5667_v2  ;;  %vm577_vm13 = vcmp.eq.s32.totalorder %v5340_v22, %v5665_v63  ;;  %v7020_v36 = vmov 0 }
 0x138   : > { %v7019_v48 = vsel %vm6337_vm7, 4294967295, %v7018_v48  ;;  %vm6345_vm11 = vmpackc.low %vm578_vm8, %vm570_vm10  ;;  %vm582_vm12 = vcmp.eq.s32.totalorder %v5259_v8, %v5827_v21  ;;  %vm590_vm0 = vcmp.eq.s32.totalorder %v5259_v8, %v5825_v20  ;;  %vm586_vm8 = vcmp.eq.s32.totalorder %v5273_v11, %v5827_v21 }
 0x139   : > { %v7021_v36 = vsel %vm6345_vm11, 4294967295, %v7020_v36  ;;  %vm6353_vm14 = vmpackc.low %vm619_vm5, %vm611_vm1  ;;  %vm594_vm10 = vcmp.eq.s32.totalorder %v5273_v11, %v5825_v20  ;;  %vm7026_vm11 = vnez %v6988_v18  ;;  %v7029_v2 = vmov 0 }
 0x13a   : > { %vm6357_vm3 = vmpackc.low %vm573_vm2, %vm565_vm15  ;;  %3556 = vmatmul.mubr.msk.bf16.gmra.mrb[56].mxu1 %vm7026_vm11, %v6992_v1  ;;  %vm581_vm5 = vcmp.eq.s32.totalorder %v5279_v13, %v5827_v21  ;;  %vm589_vm15 = vcmp.eq.s32.totalorder %v5279_v13, %v5825_v20  ;;  %vm7031_vm2 = vnez %v6996_v45  ;;  %vm585_vm11 = vcmp.eq.s32.totalorder %v5340_v22, %v5827_v21 }
 0x13b   : > { %vm6368_vm7 = vmpackc.low %vm623_vm4, %vm615_vm6  ;;  %3684 = vmatmul.mubr.msk.bf16.gmra.mrb[56].mxu0 %vm7031_vm2, %v6992_v1  ;;  %vm7032_vm6 = vnez %v7000_v19  ;;  %v7036_v45 = vmov 0  ;;  %v7038_v19 = vmov 0  ;;  %v7043_v21 = vmov 0 }
 0x13c   : > { %vm6372_vm1 = vmpackc.low %vm577_vm13, %vm569_vm9  ;;  %3558 = vmatprep.mubr.msk.bf16.mxu1 %vm7032_vm6, %v6992_v1  ;;  %vm593_vm9 = vcmp.eq.s32.totalorder %v5340_v22, %v5825_v20  ;;  %vm7035_vm13 = vnez %v7006_v39  ;;  %vm602_vm6 = vcmp.eq.s32.totalorder %v5273_v11, %v5987_v61  ;;  %v7040_v20 = vmov 0 }
 0x13d   : > { %v7030_v2 = vsel %vm6372_vm1, 4294967295, %v7029_v2  ;;  %vm6386_vm4 = vmpackc.low %vm590_vm0, %vm582_vm12  ;;  %3686 = vmatprep.mubr.msk.bf16.mxu0 %vm7035_vm13, %v6992_v1  ;;  %vm598_vm0 = vcmp.eq.s32.totalorder %v5259_v8, %v5987_v61  ;;  %vm606_vm12 = vcmp.eq.s32.totalorder %v5259_v8, %v5985_v58  ;;  %vm610_vm13 = vcmp.eq.s32.totalorder %v5273_v11, %v5985_v58 }
 0x13e   : > { %vm6397_vm1 = vmpackc.low %vm594_vm10, %vm586_vm8  ;;  %vm597_vm10 = vcmp.eq.s32.totalorder %v5279_v13, %v5987_v61 }
 0x13f   : > { %v7037_v45 = vsel %vm6397_vm1, 4294967295, %v7036_v45  ;;  %vm6405_vm2 = vmpackc.low %vm589_vm15, %vm581_vm5  ;;  %vm605_vm1 = vcmp.eq.s32.totalorder %v5279_v13, %v5985_v58  ;;  %vm601_vm15 = vcmp.eq.s32.totalorder %v5340_v22, %v5987_v61 }
 0x140   : > { %v7039_v19 = vsel %vm6405_vm2, 4294967295, %v7038_v19  ;;  %vm6413_vm8 = vmpackc.low %vm593_vm9, %vm585_vm11  ;;  %vm609_vm2 = vcmp.eq.s32.totalorder %v5340_v22, %v5985_v58  ;;  %vm614_vm9 = vcmp.eq.s32.totalorder %v5259_v8, %v6147_v41  ;;  %v7049_v58 = vmov 0 }
 0x141   : > { %v7041_v20 = vsel %vm6413_vm8, 4294967295, %v7040_v20  ;;  %vm6421_vm5 = vmpackc.low %vm606_vm12, %vm598_vm0  ;;  %vm622_vm8 = vcmp.eq.s32.totalorder %v5259_v8, %v6145_v38  ;;  %vm618_vm12 = vcmp.eq.s32.totalorder %v5273_v11, %v6147_v41 }
 0x142   : > { %7042 = vst [vmem:[#allocation13_spill] sm:$0xff] %v7041_v20  ;;  %v7044_v21 = vsel %vm6421_vm5, 4294967295, %v7043_v21  ;;  %vm6429_vm11 = vmpackc.low %vm610_vm13, %vm602_vm6  ;;  %v7047_v20 = vmov 0  ;;  %vm626_vm5 = vcmp.eq.s32.totalorder %v5273_v11, %v6145_v38  ;;  %3560 = vmatmul.mubr.msk.bf16.gmra.mrb[60].mxu1 %vm6353_vm14, %v6992_v1  ;;  %vm621_vm13 = vcmp.eq.s32.totalorder %v5279_v13, %v6145_v38 }
 0x143   : > { %vm6437_vm0 = vmpackc.low %vm605_vm1, %vm597_vm10  ;;  %vm613_vm1 = vcmp.eq.s32.totalorder %v5279_v13, %v6147_v41  ;;  %3688 = vmatmul.mubr.msk.bf16.gmra.mrb[60].mxu0 %vm6368_vm7, %v6992_v1  ;;  %vm7051_vm10 = vnez %v6781_v28  ;;  %vm617_vm14 = vcmp.eq.s32.totalorder %v5340_v22, %v6147_v41 }
 0x144   : > { %v7048_v20 = vsel %vm6437_vm0, 4294967295, %v7047_v20  ;;  %vm6448_vm6 = vmpackc.low %vm609_vm2, %vm601_vm15  ;;  %3562 = vmatprep.mubr.msk.bf16.mxu1 %vm7051_vm10, %v6992_v1  ;;  %vm625_vm2 = vcmp.eq.s32.totalorder %v5340_v22, %v6145_v38  ;;  %vm7054_vm15 = vnez %v6783_v29  ;;  %vm7062_vm10 = vnez %v6798_v33  ;;  %v7092_v22 = vld [vmem:[#allocation8_spill] sm:$0xff]  ;;  %v7096_v29 = vld [vmem:[#allocation9_spill] sm:$0xff] }
 0x145   : > { %v7050_v58 = vsel %vm6448_vm6, 4294967295, %v7049_v58  ;;  %vm6462_vm0 = vmpackc.low %vm622_vm8, %vm614_vm9  ;;  %3690 = vmatprep.mubr.msk.bf16.mxu0 %vm7054_vm15, %v6992_v1  ;;  %vm7061_vm9 = vnez %v6789_v31  ;;  %vm7069_vm15 = vnez %v6830_v57  ;;  %v7101_v31 = vld [vmem:[#allocation10_spill] sm:$0xff]  ;;  %v7103_v33 = vld [vmem:[#allocation11_spill] sm:$0xff] }
 0x146   : > { %vm6473_vm6 = vmpackc.low %vm626_vm5, %vm618_vm12  ;;  %vm7063_vm5 = vnez %v6806_v46  ;;  %vm7064_vm12 = vnez %v6810_v49  ;;  %v7105_v46 = vld [vmem:[#allocation12_spill] sm:$0xff] }
 0x147   : > { %vm6477_vm7 = vmpackc.low %vm621_vm13, %vm613_vm1  ;;  %vm7065_vm1 = vnez %v6812_v52  ;;  %vm7066_vm13 = vnez %v6815_v43 }
 0x148   : > { %vm6481_vm8 = vmpackc.low %vm625_vm2, %vm617_vm14  ;;  %vm7067_vm14 = vnez %v6819_v37  ;;  %vm7068_vm2 = vnez %v6823_v55 }
 0x149   : > { %v7117_v49 = vld [vmem:[#allocation13_spill] sm:$0xff] }
 0x14a   : > { %3564 = vmatmul.mubr.msk.bf16.vlgmr.msra.gmra.mrb[0].mxu1 %vm7061_vm9, %v6992_v1  ;;  %vm7070_vm9 = vnez %v6839_v62 }
 0x14b   : > { %3692 = vmatmul.mubr.msk.bf16.vlgmr.msra.gmra.mrb[0].mxu0 %vm7062_vm10, %v6992_v1  ;;  %3566 = vmatprep.mubr.msk.bf16.mxu1 %vm7063_vm5, %v6992_v1  ;;  %vm7071_vm10 = vnez %v6846_v51  ;;  %vm7072_vm5 = vnez %v6850_v3 }
 0x14c   : > { %3694 = vmatprep.mubr.msk.bf16.mxu0 %vm7064_vm12, %v6992_v1  ;;  %vm7073_vm12 = vnez %v6852_v4 }
 0x152   : > { %3568 = vmatmul.mubr.msk.bf16.gmra.mrb[4].mxu1 %vm7065_vm1, %v6992_v1  ;;  %vm7074_vm1 = vnez %v6855_v59 }
 0x153   : > { %3696 = vmatmul.mubr.msk.bf16.gmra.mrb[4].mxu0 %vm7066_vm13, %v6992_v1  ;;  %3570 = vmatprep.mubr.msk.bf16.mxu1 %vm7067_vm14, %v6992_v1  ;;  %vm7075_vm13 = vnez %v6859_v60  ;;  %vm7076_vm14 = vnez %v6863_v7 }
 0x154   : > { %3698 = vmatprep.mubr.msk.bf16.mxu0 %vm7068_vm2, %v6992_v1  ;;  %vm7077_vm2 = vnez %v6870_v10 }
 0x15a   : > { %3572 = vmatmul.mubr.msk.bf16.gmra.mrb[8].mxu1 %vm7069_vm15, %v6992_v1  ;;  %vm7078_vm15 = vnez %v6879_v17 }
 0x15b   : > { %3700 = vmatmul.mubr.msk.bf16.gmra.mrb[8].mxu0 %vm7070_vm9, %v6992_v1  ;;  %3574 = vmatprep.mubr.msk.bf16.mxu1 %vm7071_vm10, %v6992_v1  ;;  %vm7079_vm9 = vnez %v6886_v6  ;;  %vm7080_vm10 = vnez %v6890_v23 }
 0x15c   : > { %3702 = vmatprep.mubr.msk.bf16.mxu0 %vm7072_vm5, %v6992_v1  ;;  %vm7081_vm5 = vnez %v6892_v24 }
 0x162   : > { %3576 = vmatmul.mubr.msk.bf16.gmra.mrb[12].mxu1 %vm7073_vm12, %v6992_v1  ;;  %vm7082_vm12 = vnez %v6895_v15 }
 0x163   : > { %3704 = vmatmul.mubr.msk.bf16.gmra.mrb[12].mxu0 %vm7074_vm1, %v6992_v1  ;;  %3578 = vmatprep.mubr.msk.bf16.mxu1 %vm7075_vm13, %v6992_v1  ;;  %vm7083_vm1 = vnez %v6899_v16  ;;  %vm7084_vm13 = vnez %v6903_v27 }
 0x164   : > { %3706 = vmatprep.mubr.msk.bf16.mxu0 %vm7076_vm14, %v6992_v1  ;;  %vm7085_vm14 = vnez %v6910_v32 }
 0x16a   : > { %3580 = vmatmul.mubr.msk.bf16.gmra.mrb[16].mxu1 %vm7077_vm2, %v6992_v1  ;;  %vm7086_vm2 = vnez %v6919_v56 }
 0x16b   : > { %3708 = vmatmul.mubr.msk.bf16.gmra.mrb[16].mxu0 %vm7078_vm15, %v6992_v1  ;;  %3582 = vmatprep.mubr.msk.bf16.mxu1 %vm7079_vm9, %v6992_v1  ;;  %vm7087_vm15 = vnez %v6926_v26  ;;  %vm7088_vm9 = vnez %v6930_v50  ;;  %v7122_v50 = vlaneseq }
 0x16c   : > { %3710 = vmatprep.mubr.msk.bf16.mxu0 %vm7080_vm10, %v6992_v1  ;;  %vm7089_vm10 = vnez %v6932_v9 }
 0x16d   : > { %v6673_v9 = vshrl.u32 %v7122_v50, 7 }
 0x172   : > { %3584 = vmatmul.mubr.msk.bf16.gmra.mrb[20].mxu1 %vm7081_vm5, %v6992_v1  ;;  %vm7090_vm5 = vnez %v6935_v34 }
 0x173   : > { %3712 = vmatmul.mubr.msk.bf16.gmra.mrb[20].mxu0 %vm7082_vm12, %v6992_v1  ;;  %3586 = vmatprep.mubr.msk.bf16.mxu1 %vm7083_vm1, %v6992_v1  ;;  %vm7091_vm12 = vnez %v6939_v44  ;;  %vm7093_vm1 = vnez %v7092_v22 }
 0x174   : > { %3714 = vmatprep.mubr.msk.bf16.mxu0 %vm7084_vm13, %v6992_v1  ;;  %vm7094_vm13 = vnez %v6951_v5  ;;  %v6678_v5 = vld [vmem:[%s232_s26] sm:$0x3] }
 0x17a   : > { %3588 = vmatmul.mubr.msk.bf16.gmra.mrb[24].mxu1 %vm7085_vm14, %v6992_v1  ;;  %vm7095_vm14 = vnez %v6960_v30  ;;  %v2878_v30 = vsub.s32 1, %v6673_v9 }
 0x17b   : > { %3716 = vmatmul.mubr.msk.bf16.gmra.mrb[24].mxu0 %vm7086_vm2, %v6992_v1  ;;  %3590 = vmatprep.mubr.msk.bf16.mxu1 %vm7087_vm15, %v6992_v1  ;;  %vm7097_vm2 = vnez %v7096_v29  ;;  %vm7098_vm15 = vnez %v6972_v54 }
 0x17c   : > { %3718 = vmatprep.mubr.msk.bf16.mxu0 %vm7088_vm9, %v6992_v1  ;;  %vm7099_vm9 = vnez %v6975_v25 }
 0x182   : > { %3592 = vmatmul.mubr.msk.bf16.gmra.mrb[28].mxu1 %vm7089_vm10, %v6992_v1  ;;  %vm7100_vm10 = vnez %v6978_v0 }
 0x183   : > { %3720 = vmatmul.mubr.msk.bf16.gmra.mrb[28].mxu0 %vm7090_vm5, %v6992_v1  ;;  %3594 = vmatprep.mubr.msk.bf16.mxu1 %vm7091_vm12, %v6992_v1  ;;  %vm7102_vm5 = vnez %v7101_v31  ;;  %vm7104_vm12 = vnez %v7103_v33 }
 0x184   : > { %3722 = vmatprep.mubr.msk.bf16.mxu0 %vm7093_vm1, %v6992_v1  ;;  %vm7106_vm1 = vnez %v7105_v46 }
 0x18a   : > { %3596 = vmatmul.mubr.msk.bf16.gmra.mrb[32].mxu1 %vm7094_vm13, %v6992_v1  ;;  %vm7107_vm13 = vnez %v7002_v14  ;;  %v2879_v14 = vrot.slane %v6678_v5, %v2878_v30 }
 0x18b   : > { %3724 = vmatmul.mubr.msk.bf16.gmra.mrb[32].mxu0 %vm7095_vm14, %v6992_v1  ;;  %3598 = vmatprep.mubr.msk.bf16.mxu1 %vm7097_vm2, %v6992_v1  ;;  %vm7108_vm14 = vnez %v7009_v35  ;;  %vm7109_vm2 = vnez %v7013_v40 }
 0x18c   : > { %3726 = vmatprep.mubr.msk.bf16.mxu0 %vm7098_vm15, %v6992_v1  ;;  %vm7110_vm15 = vnez %v7015_v12 }
 0x192   : > { %3600 = vmatmul.mubr.msk.bf16.gmra.mrb[36].mxu1 %vm7099_vm9, %v6992_v1  ;;  %vm7111_vm9 = vnez %v7017_v47 }
 0x193   : > { %3728 = vmatmul.mubr.msk.bf16.gmra.mrb[36].mxu0 %vm7100_vm10, %v6992_v1  ;;  %3602 = vmatprep.mubr.msk.bf16.mxu1 %vm7102_vm5, %v6992_v1  ;;  %vm7112_vm10 = vnez %v7019_v48  ;;  %vm7113_vm5 = vnez %v7021_v36 }
 0x194   : > { %3730 = vmatprep.mubr.msk.bf16.mxu0 %vm7104_vm12, %v6992_v1  ;;  %vm7114_vm12 = vnez %v7030_v2 }
 0x19a   : > { %3604 = vmatmul.mubr.msk.bf16.gmra.mrb[40].mxu1 %vm7106_vm1, %v6992_v1  ;;  %vm7115_vm1 = vnez %v7037_v45 }
 0x19b   : > { %3732 = vmatmul.mubr.msk.bf16.gmra.mrb[40].mxu0 %vm7107_vm13, %v6992_v1  ;;  %3606 = vmatprep.mubr.msk.bf16.mxu1 %vm7108_vm14, %v6992_v1  ;;  %vm7116_vm13 = vnez %v7039_v19  ;;  %vm7118_vm14 = vnez %v7117_v49 }
 0x19c   : > { %3734 = vmatprep.mubr.msk.bf16.mxu0 %vm7109_vm2, %v6992_v1  ;;  %vm7121_vm2 = vnez %v7050_v58 }
 0x1a2   : > { %3608 = vmatmul.mubr.msk.bf16.gmra.mrb[44].mxu1 %vm7110_vm15, %v6992_v1 }
 0x1a3   : > { %3736 = vmatmul.mubr.msk.bf16.gmra.mrb[44].mxu0 %vm7111_vm9, %v6992_v1  ;;  %3610 = vmatprep.mubr.msk.bf16.mxu1 %vm7112_vm10, %v6992_v1 }
 0x1a4   : > { %3738 = vmatprep.mubr.msk.bf16.mxu0 %vm7113_vm5, %v6992_v1 }
 0x1aa   : > { %3612 = vmatmul.mubr.msk.bf16.gmra.mrb[48].mxu1 %vm6357_vm3, %v6992_v1  ;;  %vm7119_vm3 = vnez %v7044_v21 }
 0x1ab   : > { %3740 = vmatmul.mubr.msk.bf16.gmra.mrb[48].mxu0 %vm7114_vm12, %v6992_v1  ;;  %3614 = vmatprep.mubr.msk.bf16.mxu1 %vm6386_vm4, %v6992_v1  ;;  %vm7120_vm4 = vnez %v7048_v20 }
 0x1ac   : > { %3742 = vmatprep.mubr.msk.bf16.mxu0 %vm7115_vm1, %v6992_v1 }
 0x1b2   : > { %3616 = vmatmul.mubr.msk.bf16.gmra.mrb[52].mxu1 %vm7116_vm13, %v6992_v1 }
 0x1b3   : > { %3744 = vmatmul.mubr.msk.bf16.gmra.mrb[52].mxu0 %vm7118_vm14, %v6992_v1  ;;  %3618 = vmatprep.mubr.msk.bf16.mxu1 %vm7119_vm3, %v6992_v1 }
 0x1b4   : > { %3746 = vmatprep.mubr.msk.bf16.mxu0 %vm6429_vm11, %v6992_v1  ;;  %vm6686_vm11 = vcmp.lt.s32.totalorder %v7122_v50, 256 }
 0x1ba   : > { %3620 = vmatmul.mubr.msk.bf16.gmra.mrb[56].mxu1 %vm7120_vm4, %v6992_v1 }
 0x1bb   : > { %3748 = vmatmul.mubr.msk.bf16.gmra.mrb[56].mxu0 %vm7121_vm2, %v6992_v1  ;;  %3622 = vmatprep.mubr.msk.bf16.mxu1 %vm6462_vm0, %v6992_v1 }
 0x1bc   : > { %3750 = vmatprep.mubr.msk.bf16.mxu0 %vm6473_vm6, %v6992_v1 }
 0x1c2   : > { %3624 = vmatmul.mubr.msk.bf16.gmra.mrb[60].mxu1 %vm6477_vm7, %v6992_v1 }
 0x1c3   : > { %3752 = vmatmul.mubr.msk.bf16.gmra.mrb[60].mxu0 %vm6481_vm8, %v6992_v1  ;;  %2946 = vmatprep.mubr.f32.mxu1 %v2879_v14 }
 0x21d   : > { %v2262_v52 = vpop.f32.mrb[0].mxu1 }
 0x21e   : > { %v2648_v43 = vpop.f32.mrb[0].mxu0  ;;  %v2264_v37 = vpop.f32.mrb[1].mxu1 }
 0x21f   : > { %v3824_v55 = vadd.f32 %v2648_v43, %v2262_v52  ;;  %v2650_v57 = vpop.f32.mrb[1].mxu0  ;;  %v2266_v62 = vpop.f32.mrb[2].mxu1 }
 0x220   : > { %v3825_v51 = vadd.f32 %v2650_v57, %v2264_v37  ;;  %v2652_v3 = vpop.f32.mrb[2].mxu0  ;;  %v2268_v4 = vpop.f32.mrb[3].mxu1 }
 0x221   : > { %4270 = vtanh.f32 %v3824_v55  ;;  %v3826_v59 = vadd.f32 %v2652_v3, %v2266_v62  ;;  %v2654_v60 = vpop.f32.mrb[3].mxu0 }
 0x222   : > { %4272 = vtanh.f32 %v3825_v51  ;;  %v3827_v7 = vadd.f32 %v2654_v60, %v2268_v4 }
 0x223   : > { %4274 = vtanh.f32 %v3826_v59 }
 0x224   : > { %4276 = vtanh.f32 %v3827_v7 }
 0x225   : > { %v2272_v10 = vpop.f32.mrb[4].mxu1 }
 0x226   : > { %v2658_v17 = vpop.f32.mrb[4].mxu0  ;;  %v2274_v6 = vpop.f32.mrb[5].mxu1 }
 0x227   : > { %v3828_v23 = vadd.f32 %v2658_v17, %v2272_v10  ;;  %v2660_v24 = vpop.f32.mrb[5].mxu0  ;;  %v2276_v15 = vpop.f32.mrb[6].mxu1 }
 0x228   : > { %v3829_v16 = vadd.f32 %v2660_v24, %v2274_v6  ;;  %v2662_v27 = vpop.f32.mrb[6].mxu0  ;;  %v2278_v32 = vpop.f32.mrb[7].mxu1 }
 0x229   : > { %4278 = vtanh.f32 %v3828_v23  ;;  %v3830_v56 = vadd.f32 %v2662_v27, %v2276_v15  ;;  %v2664_v26 = vpop.f32.mrb[7].mxu0 }
 0x22a   : > { %4280 = vtanh.f32 %v3829_v16  ;;  %v3831_v61 = vadd.f32 %v2664_v26, %v2278_v32 }
 0x22b   : > { %v4271_v34 = vpop.eup %4270  ;;  %4282 = vtanh.f32 %v3830_v56 }
 0x22c   : > { %v4273_v44 = vpop.eup %4272  ;;  %4284 = vtanh.f32 %v3831_v61 }
 0x22d   : > { %v4275_v54 = vpop.eup %4274  ;;  %v2282_v38 = vpop.f32.mrb[8].mxu1 }
 0x22e   : > { %v4277_v41 = vpop.eup %4276  ;;  %v2668_v25 = vpop.f32.mrb[8].mxu0  ;;  %v3762_v1 = vpack.c.bf16 %v4275_v54, %v4271_v34 }
 0x22f   : > { %v2284_v0 = vpop.f32.mrb[9].mxu1  ;;  %v3832_v35 = vadd.f32 %v2668_v25, %v2282_v38  ;;  %v2670_v40 = vpop.f32.mrb[9].mxu0  ;;  %v3760_v47 = vpack.c.bf16 %v4277_v41, %v4273_v44 }
 0x230   : > { %v2286_v12 = vpop.f32.mrb[10].mxu1  ;;  %v3833_v48 = vadd.f32 %v2670_v40, %v2284_v0  ;;  %v2672_v36 = vpop.f32.mrb[10].mxu0 }
 0x231   : > { %v2288_v42 = vpop.f32.mrb[11].mxu1  ;;  %4286 = vtanh.f32 %v3832_v35  ;;  %v3834_v53 = vadd.f32 %v2672_v36, %v2286_v12  ;;  %v2674_v63 = vpop.f32.mrb[11].mxu0  ;;  %3761 = vmatprep.subr.bf16.mxu1 %v3760_v47 }
 0x232   : > { %4288 = vtanh.f32 %v3833_v48  ;;  %v3835_v2 = vadd.f32 %v2674_v63, %v2288_v42  ;;  %3763 = vmatpush1.bf16.msra.mxu1 %v3762_v1 }
 0x233   : > { %v4279_v18 = vpop.eup %4278  ;;  %4290 = vtanh.f32 %v3834_v53 }
 0x234   : > { %v4281_v45 = vpop.eup %4280  ;;  %4292 = vtanh.f32 %v3835_v2 }
 0x235   : > { %v4283_v19 = vpop.eup %4282  ;;  %v2292_v20 = vpop.f32.mrb[12].mxu1 }
 0x236   : > { %v4285_v21 = vpop.eup %4284  ;;  %v2678_v39 = vpop.f32.mrb[12].mxu0  ;;  %v3766_v8 = vpack.c.bf16 %v4283_v19, %v4279_v18 }
 0x237   : > { %v2294_v58 = vpop.f32.mrb[13].mxu1  ;;  %v3836_v11 = vadd.f32 %v2678_v39, %v2292_v20  ;;  %v2680_v13 = vpop.f32.mrb[13].mxu0  ;;  %v3764_v22 = vpack.c.bf16 %v4285_v21, %v4281_v45 }
 0x238   : > { %v2296_v28 = vpop.f32.mrb[14].mxu1  ;;  %v3837_v29 = vadd.f32 %v2680_v13, %v2294_v58  ;;  %v2682_v31 = vpop.f32.mrb[14].mxu0 }
 0x239   : > { %v2298_v33 = vpop.f32.mrb[15].mxu1  ;;  %4294 = vtanh.f32 %v3836_v11  ;;  %v3838_v46 = vadd.f32 %v2682_v31, %v2296_v28  ;;  %v2684_v49 = vpop.f32.mrb[15].mxu0  ;;  %3765 = vmatprep.subr.bf16.mxu1 %v3764_v22 }
 0x23a   : > { %4296 = vtanh.f32 %v3837_v29  ;;  %v3839_v52 = vadd.f32 %v2684_v49, %v2298_v33  ;;  %3767 = vmatpush1.bf16.msra.mxu1 %v3766_v8 }
 0x23b   : > { %v4287_v43 = vpop.eup %4286  ;;  %4298 = vtanh.f32 %v3838_v46 }
 0x23c   : > { %v4289_v37 = vpop.eup %4288  ;;  %4300 = vtanh.f32 %v3839_v52 }
 0x23d   : > { %v4291_v55 = vpop.eup %4290  ;;  %v2302_v57 = vpop.f32.mrb[16].mxu1 }
 0x23e   : > { %v4293_v62 = vpop.eup %4292  ;;  %v2688_v51 = vpop.f32.mrb[16].mxu0  ;;  %v3770_v4 = vpack.c.bf16 %v4291_v55, %v4287_v43 }
 0x23f   : > { %v2304_v3 = vpop.f32.mrb[17].mxu1  ;;  %v3840_v59 = vadd.f32 %v2688_v51, %v2302_v57  ;;  %v2690_v60 = vpop.f32.mrb[17].mxu0  ;;  %v3768_v10 = vpack.c.bf16 %v4293_v62, %v4289_v37 }
 0x240   : > { %v2306_v7 = vpop.f32.mrb[18].mxu1  ;;  %v3841_v17 = vadd.f32 %v2690_v60, %v2304_v3  ;;  %v2692_v6 = vpop.f32.mrb[18].mxu0 }
 0x241   : > { %v2308_v23 = vpop.f32.mrb[19].mxu1  ;;  %4302 = vtanh.f32 %v3840_v59  ;;  %v3842_v24 = vadd.f32 %v2692_v6, %v2306_v7  ;;  %v2694_v15 = vpop.f32.mrb[19].mxu0  ;;  %3769 = vmatprep.subr.bf16.mxu1 %v3768_v10 }
 0x242   : > { %4304 = vtanh.f32 %v3841_v17  ;;  %v3843_v16 = vadd.f32 %v2694_v15, %v2308_v23  ;;  %3771 = vmatpush1.bf16.msra.mxu1 %v3770_v4 }
 0x243   : > { %v4295_v27 = vpop.eup %4294  ;;  %4306 = vtanh.f32 %v3842_v24 }
 0x244   : > { %v4297_v32 = vpop.eup %4296  ;;  %4308 = vtanh.f32 %v3843_v16 }
 0x245   : > { %v4299_v56 = vpop.eup %4298  ;;  %v2312_v26 = vpop.f32.mrb[20].mxu1 }
 0x246   : > { %v4301_v61 = vpop.eup %4300  ;;  %v2698_v34 = vpop.f32.mrb[20].mxu0  ;;  %v3774_v30 = vpack.c.bf16 %v4299_v56, %v4295_v27 }
 0x247   : > { %v2314_v44 = vpop.f32.mrb[21].mxu1  ;;  %v3844_v54 = vadd.f32 %v2698_v34, %v2312_v26  ;;  %v2700_v38 = vpop.f32.mrb[21].mxu0  ;;  %v3772_v25 = vpack.c.bf16 %v4301_v61, %v4297_v32 }
 0x248   : > { %v2316_v41 = vpop.f32.mrb[22].mxu1  ;;  %v3845_v0 = vadd.f32 %v2700_v38, %v2314_v44  ;;  %v2702_v1 = vpop.f32.mrb[22].mxu0 }
 0x249   : > { %v2318_v14 = vpop.f32.mrb[23].mxu1  ;;  %4310 = vtanh.f32 %v3844_v54  ;;  %v3846_v35 = vadd.f32 %v2702_v1, %v2316_v41  ;;  %v2704_v40 = vpop.f32.mrb[23].mxu0  ;;  %3773 = vmatprep.subr.bf16.mxu1 %v3772_v25 }
 0x24a   : > { %4312 = vtanh.f32 %v3845_v0  ;;  %v3847_v12 = vadd.f32 %v2704_v40, %v2318_v14  ;;  %3775 = vmatpush1.bf16.msra.mxu1 %v3774_v30 }
 0x24b   : > { %v4303_v47 = vpop.eup %4302  ;;  %4314 = vtanh.f32 %v3846_v35 }
 0x24c   : > { %v4305_v48 = vpop.eup %4304  ;;  %4316 = vtanh.f32 %v3847_v12 }
 0x24d   : > { %v4307_v36 = vpop.eup %4306  ;;  %v2322_v42 = vpop.f32.mrb[24].mxu1 }
 0x24e   : > { %v4309_v53 = vpop.eup %4308  ;;  %v2708_v63 = vpop.f32.mrb[24].mxu0  ;;  %v3778_v18 = vpack.c.bf16 %v4307_v36, %v4303_v47 }
 0x24f   : > { %v2324_v2 = vpop.f32.mrb[25].mxu1  ;;  %v3848_v45 = vadd.f32 %v2708_v63, %v2322_v42  ;;  %v2710_v19 = vpop.f32.mrb[25].mxu0  ;;  %v3776_v21 = vpack.c.bf16 %v4309_v53, %v4305_v48 }
 0x250   : > { %v2326_v20 = vpop.f32.mrb[26].mxu1  ;;  %v3849_v39 = vadd.f32 %v2710_v19, %v2324_v2  ;;  %v2712_v58 = vpop.f32.mrb[26].mxu0 }
 0x251   : > { %v2328_v8 = vpop.f32.mrb[27].mxu1  ;;  %4318 = vtanh.f32 %v3848_v45  ;;  %v3850_v11 = vadd.f32 %v2712_v58, %v2326_v20  ;;  %v2714_v13 = vpop.f32.mrb[27].mxu0  ;;  %3777 = vmatprep.subr.bf16.mxu1 %v3776_v21 }
 0x252   : > { %4320 = vtanh.f32 %v3849_v39  ;;  %v3851_v28 = vadd.f32 %v2714_v13, %v2328_v8  ;;  %3779 = vmatpush1.bf16.msra.mxu1 %v3778_v18 }
 0x253   : > { %v4311_v22 = vpop.eup %4310  ;;  %4322 = vtanh.f32 %v3850_v11 }
 0x254   : > { %v4313_v29 = vpop.eup %4312  ;;  %4324 = vtanh.f32 %v3851_v28 }
 0x255   : > { %v4315_v31 = vpop.eup %4314  ;;  %v2332_v33 = vpop.f32.mrb[28].mxu1 }
 0x256   : > { %v4317_v46 = vpop.eup %4316  ;;  %v2718_v49 = vpop.f32.mrb[28].mxu0  ;;  %v3782_v43 = vpack.c.bf16 %v4315_v31, %v4311_v22 }
 0x257   : > { %v2334_v52 = vpop.f32.mrb[29].mxu1  ;;  %v3852_v37 = vadd.f32 %v2718_v49, %v2332_v33  ;;  %v2720_v55 = vpop.f32.mrb[29].mxu0  ;;  %v3780_v62 = vpack.c.bf16 %v4317_v46, %v4313_v29 }
 0x258   : > { %v2336_v57 = vpop.f32.mrb[30].mxu1  ;;  %v3853_v51 = vadd.f32 %v2720_v55, %v2334_v52  ;;  %v2722_v3 = vpop.f32.mrb[30].mxu0 }
 0x259   : > { %v2338_v4 = vpop.f32.mrb[31].mxu1  ;;  %4326 = vtanh.f32 %v3852_v37  ;;  %v3854_v59 = vadd.f32 %v2722_v3, %v2336_v57  ;;  %v2724_v60 = vpop.f32.mrb[31].mxu0  ;;  %3781 = vmatprep.subr.bf16.mxu1 %v3780_v62 }
 0x25a   : > { %4328 = vtanh.f32 %v3853_v51  ;;  %v3855_v7 = vadd.f32 %v2724_v60, %v2338_v4  ;;  %3783 = vmatpush1.bf16.msra.mxu1 %v3782_v43 }
 0x25b   : > { %v4319_v10 = vpop.eup %4318  ;;  %4330 = vtanh.f32 %v3854_v59 }
 0x25c   : > { %v4321_v17 = vpop.eup %4320  ;;  %4332 = vtanh.f32 %v3855_v7 }
 0x25d   : > { %v4323_v6 = vpop.eup %4322  ;;  %v2342_v23 = vpop.f32.mrb[32].mxu1 }
 0x25e   : > { %v4325_v24 = vpop.eup %4324  ;;  %v2728_v15 = vpop.f32.mrb[32].mxu0  ;;  %v3786_v27 = vpack.c.bf16 %v4323_v6, %v4319_v10 }
 0x25f   : > { %v2344_v16 = vpop.f32.mrb[33].mxu1  ;;  %v3856_v32 = vadd.f32 %v2728_v15, %v2342_v23  ;;  %v2730_v56 = vpop.f32.mrb[33].mxu0  ;;  %v3784_v61 = vpack.c.bf16 %v4325_v24, %v4321_v17 }
 0x260   : > { %v2346_v26 = vpop.f32.mrb[34].mxu1  ;;  %v3857_v34 = vadd.f32 %v2730_v56, %v2344_v16  ;;  %v2732_v44 = vpop.f32.mrb[34].mxu0 }
 0x261   : > { %v2348_v30 = vpop.f32.mrb[35].mxu1  ;;  %4334 = vtanh.f32 %v3856_v32  ;;  %v3858_v54 = vadd.f32 %v2732_v44, %v2346_v26  ;;  %v2734_v38 = vpop.f32.mrb[35].mxu0  ;;  %3785 = vmatprep.subr.bf16.mxu1 %v3784_v61 }
 0x262   : > { %4336 = vtanh.f32 %v3857_v34  ;;  %v3859_v41 = vadd.f32 %v2734_v38, %v2348_v30  ;;  %3787 = vmatpush1.bf16.msra.mxu1 %v3786_v27 }
 0x263   : > { %v4327_v25 = vpop.eup %4326  ;;  %4338 = vtanh.f32 %v3858_v54 }
 0x264   : > { %v4329_v0 = vpop.eup %4328  ;;  %4340 = vtanh.f32 %v3859_v41 }
 0x265   : > { %v4331_v1 = vpop.eup %4330  ;;  %v2352_v14 = vpop.f32.mrb[36].mxu1 }
 0x266   : > { %v4333_v35 = vpop.eup %4332  ;;  %v2738_v40 = vpop.f32.mrb[36].mxu0  ;;  %v3790_v47 = vpack.c.bf16 %v4331_v1, %v4327_v25 }
 0x267   : > { %v2354_v12 = vpop.f32.mrb[37].mxu1  ;;  %v3860_v48 = vadd.f32 %v2738_v40, %v2352_v14  ;;  %v2740_v36 = vpop.f32.mrb[37].mxu0  ;;  %v3788_v53 = vpack.c.bf16 %v4333_v35, %v4329_v0 }
 0x268   : > { %v2356_v42 = vpop.f32.mrb[38].mxu1  ;;  %v3861_v63 = vadd.f32 %v2740_v36, %v2354_v12  ;;  %v2742_v2 = vpop.f32.mrb[38].mxu0 }
 0x269   : > { %v2358_v18 = vpop.f32.mrb[39].mxu1  ;;  %4342 = vtanh.f32 %v3860_v48  ;;  %v3862_v45 = vadd.f32 %v2742_v2, %v2356_v42  ;;  %v2744_v19 = vpop.f32.mrb[39].mxu0  ;;  %3789 = vmatprep.subr.bf16.mxu1 %v3788_v53 }
 0x26a   : > { %4344 = vtanh.f32 %v3861_v63  ;;  %v3863_v20 = vadd.f32 %v2744_v19, %v2358_v18  ;;  %3791 = vmatpush1.bf16.msra.mxu1 %v3790_v47 }
 0x26b   : > { %v4335_v21 = vpop.eup %4334  ;;  %4346 = vtanh.f32 %v3862_v45 }
 0x26c   : > { %v4337_v39 = vpop.eup %4336  ;;  %4348 = vtanh.f32 %v3863_v20 }
 0x26d   : > { %v4339_v58 = vpop.eup %4338  ;;  %v2362_v8 = vpop.f32.mrb[40].mxu1 }
 0x26e   : > { %v4341_v11 = vpop.eup %4340  ;;  %v2748_v13 = vpop.f32.mrb[40].mxu0  ;;  %v3794_v22 = vpack.c.bf16 %v4339_v58, %v4335_v21 }
 0x26f   : > { %v2364_v28 = vpop.f32.mrb[41].mxu1  ;;  %v3864_v29 = vadd.f32 %v2748_v13, %v2362_v8  ;;  %v2750_v31 = vpop.f32.mrb[41].mxu0  ;;  %v3792_v46 = vpack.c.bf16 %v4341_v11, %v4337_v39 }
 0x270   : > { %v2366_v33 = vpop.f32.mrb[42].mxu1  ;;  %v3865_v49 = vadd.f32 %v2750_v31, %v2364_v28  ;;  %v2752_v52 = vpop.f32.mrb[42].mxu0 }
 0x271   : > { %v2368_v43 = vpop.f32.mrb[43].mxu1  ;;  %4350 = vtanh.f32 %v3864_v29  ;;  %v3866_v37 = vadd.f32 %v2752_v52, %v2366_v33  ;;  %v2754_v55 = vpop.f32.mrb[43].mxu0  ;;  %3793 = vmatprep.subr.bf16.mxu1 %v3792_v46 }
 0x272   : > { %4352 = vtanh.f32 %v3865_v49  ;;  %v3867_v57 = vadd.f32 %v2754_v55, %v2368_v43  ;;  %3795 = vmatpush1.bf16.msra.mxu1 %v3794_v22 }
 0x273   : > { %v4343_v62 = vpop.eup %4342  ;;  %4354 = vtanh.f32 %v3866_v37 }
 0x274   : > { %v4345_v51 = vpop.eup %4344  ;;  %4356 = vtanh.f32 %v3867_v57 }
 0x275   : > { %v4347_v3 = vpop.eup %4346  ;;  %v2372_v4 = vpop.f32.mrb[44].mxu1 }
 0x276   : > { %v4349_v59 = vpop.eup %4348  ;;  %v2758_v60 = vpop.f32.mrb[44].mxu0  ;;  %v3798_v10 = vpack.c.bf16 %v4347_v3, %v4343_v62 }
 0x277   : > { %v2374_v7 = vpop.f32.mrb[45].mxu1  ;;  %v3868_v17 = vadd.f32 %v2758_v60, %v2372_v4  ;;  %v2760_v6 = vpop.f32.mrb[45].mxu0  ;;  %v3796_v24 = vpack.c.bf16 %v4349_v59, %v4345_v51 }
 0x278   : > { %v2376_v23 = vpop.f32.mrb[46].mxu1  ;;  %v3869_v15 = vadd.f32 %v2760_v6, %v2374_v7  ;;  %v2762_v16 = vpop.f32.mrb[46].mxu0 }
 0x279   : > { %v2378_v27 = vpop.f32.mrb[47].mxu1  ;;  %4358 = vtanh.f32 %v3868_v17  ;;  %v3870_v32 = vadd.f32 %v2762_v16, %v2376_v23  ;;  %v2764_v56 = vpop.f32.mrb[47].mxu0  ;;  %3797 = vmatprep.subr.bf16.mxu1 %v3796_v24 }
 0x27a   : > { %4360 = vtanh.f32 %v3869_v15  ;;  %v3871_v26 = vadd.f32 %v2764_v56, %v2378_v27  ;;  %3799 = vmatpush1.bf16.msra.mxu1 %v3798_v10 }
 0x27b   : > { %v4351_v61 = vpop.eup %4350  ;;  %4362 = vtanh.f32 %v3870_v32 }
 0x27c   : > { %v4353_v34 = vpop.eup %4352  ;;  %4364 = vtanh.f32 %v3871_v26 }
 0x27d   : > { %v4355_v44 = vpop.eup %4354  ;;  %v2382_v30 = vpop.f32.mrb[48].mxu1 }
 0x27e   : > { %v4357_v54 = vpop.eup %4356  ;;  %v2768_v38 = vpop.f32.mrb[48].mxu0  ;;  %v3802_v25 = vpack.c.bf16 %v4355_v44, %v4351_v61 }
 0x27f   : > { %v2384_v41 = vpop.f32.mrb[49].mxu1  ;;  %v3872_v0 = vadd.f32 %v2768_v38, %v2382_v30  ;;  %v2770_v1 = vpop.f32.mrb[49].mxu0  ;;  %v3800_v35 = vpack.c.bf16 %v4357_v54, %v4353_v34 }
 0x280   : > { %v2386_v14 = vpop.f32.mrb[50].mxu1  ;;  %v3873_v40 = vadd.f32 %v2770_v1, %v2384_v41  ;;  %v2772_v12 = vpop.f32.mrb[50].mxu0 }
 0x281   : > { %v2388_v47 = vpop.f32.mrb[51].mxu1  ;;  %4366 = vtanh.f32 %v3872_v0  ;;  %v3874_v48 = vadd.f32 %v2772_v12, %v2386_v14  ;;  %v2774_v36 = vpop.f32.mrb[51].mxu0  ;;  %3801 = vmatprep.subr.bf16.mxu1 %v3800_v35 }
 0x282   : > { %4368 = vtanh.f32 %v3873_v40  ;;  %v3875_v42 = vadd.f32 %v2774_v36, %v2388_v47  ;;  %3803 = vmatpush1.bf16.msra.mxu1 %v3802_v25 }
 0x283   : > { %v4359_v53 = vpop.eup %4358  ;;  %4370 = vtanh.f32 %v3874_v48 }
 0x284   : > { %v4361_v63 = vpop.eup %4360  ;;  %4372 = vtanh.f32 %v3875_v42 }
 0x285   : > { %v4363_v2 = vpop.eup %4362  ;;  %v2392_v18 = vpop.f32.mrb[52].mxu1 }
 0x286   : > { %v4365_v45 = vpop.eup %4364  ;;  %v2778_v19 = vpop.f32.mrb[52].mxu0  ;;  %v3806_v21 = vpack.c.bf16 %v4363_v2, %v4359_v53  ;;  %v2874_v2 = vsub.s32 0, %v6673_v9 }
 0x287   : > { %v2394_v20 = vpop.f32.mrb[53].mxu1  ;;  %v3876_v39 = vadd.f32 %v2778_v19, %v2392_v18  ;;  %v2780_v58 = vpop.f32.mrb[53].mxu0  ;;  %v3804_v11 = vpack.c.bf16 %v4365_v45, %v4361_v63 }
 0x288   : > { %v2396_v8 = vpop.f32.mrb[54].mxu1  ;;  %v3877_v13 = vadd.f32 %v2780_v58, %v2394_v20  ;;  %v2782_v28 = vpop.f32.mrb[54].mxu0  ;;  %v2875_v20 = vrot.slane %v6678_v5, %v2874_v2  ;;  %v4496_v58 = vmov 1966171168  }
 0x289   : > { %v2398_v22 = vpop.f32.mrb[55].mxu1  ;;  %4374 = vtanh.f32 %v3876_v39  ;;  %v3878_v29 = vadd.f32 %v2782_v28, %v2396_v8  ;;  %v2784_v31 = vpop.f32.mrb[55].mxu0  ;;  %3805 = vmatprep.subr.bf16.mxu1 %v3804_v11  ;;  %v4495_v39 = vmov 0.0   ;;  %v2967_v8 = vunpack.c.l.s4 %v4496_v58 }
 0x28a   : > { %4376 = vtanh.f32 %v3877_v13  ;;  %v3879_v33 = vadd.f32 %v2784_v31, %v2398_v22  ;;  %3807 = vmatpush1.bf16.msra.mxu1 %v3806_v21  ;;  %2961 = vst.msk [vmem:[%s215_s30] sm:$0x3] %vm6686_vm11, %v4495_v39 }
 0x28b   : > { %v4367_v46 = vpop.eup %4366  ;;  %4378 = vtanh.f32 %v3878_v29  ;;  %v2968_v11 = vunpack.c.0.s8 %v2967_v8 }
 0x28c   : > { %v4369_v49 = vpop.eup %4368  ;;  %4380 = vtanh.f32 %v3879_v33 }
 0x28d   : > { %v4371_v52 = vpop.eup %4370  ;;  %v2402_v43 = vpop.f32.mrb[56].mxu1  ;;  %v2971_v13 = vsub.s32 %v2968_v11, %v6673_v9 }
 0x28e   : > { %v4373_v37 = vpop.eup %4372  ;;  %v2788_v55 = vpop.f32.mrb[56].mxu0  ;;  %v3810_v62 = vpack.c.bf16 %v4371_v52, %v4367_v46  ;;  %v2992_v46 = vstv %s2991_s7 }
 0x28f   : > { %v2404_v57 = vpop.f32.mrb[57].mxu1  ;;  %v3880_v51 = vadd.f32 %v2788_v55, %v2402_v43  ;;  %v2790_v3 = vpop.f32.mrb[57].mxu0  ;;  %v3808_v59 = vpack.c.bf16 %v4373_v37, %v4369_v49 }
 0x290   : > { %v2406_v4 = vpop.f32.mrb[58].mxu1  ;;  %v3881_v60 = vadd.f32 %v2790_v3, %v2404_v57  ;;  %v2792_v7 = vpop.f32.mrb[58].mxu0 }
 0x291   : > { %v2408_v10 = vpop.f32.mrb[59].mxu1  ;;  %4382 = vtanh.f32 %v3880_v51  ;;  %v3882_v17 = vadd.f32 %v2792_v7, %v2406_v4  ;;  %v2794_v6 = vpop.f32.mrb[59].mxu0  ;;  %3809 = vmatprep.subr.bf16.mxu1 %v3808_v59  ;;  %v2962_v50 = vld [vmem:[%s215_s30] sm:$0x3] }
 0x292   : > { %4384 = vtanh.f32 %v3881_v60  ;;  %v3883_v23 = vadd.f32 %v2794_v6, %v2408_v10  ;;  %3811 = vmatpush1.bf16.msra.mxu1 %v3810_v62 }
 0x293   : > { %v4375_v24 = vpop.eup %4374  ;;  %4386 = vtanh.f32 %v3882_v17 }
 0x294   : > { %v4377_v15 = vpop.eup %4376  ;;  %4388 = vtanh.f32 %v3883_v23 }
 0x295   : > { %v4379_v16 = vpop.eup %4378  ;;  %v2412_v27 = vpop.f32.mrb[60].mxu1 }
 0x296   : > { %v4381_v32 = vpop.eup %4380  ;;  %v2798_v56 = vpop.f32.mrb[60].mxu0  ;;  %v3814_v61 = vpack.c.bf16 %v4379_v16, %v4375_v24 }
 0x297   : > { %v2414_v26 = vpop.f32.mrb[61].mxu1  ;;  %v3884_v34 = vadd.f32 %v2798_v56, %v2412_v27  ;;  %v2800_v44 = vpop.f32.mrb[61].mxu0  ;;  %v3812_v54 = vpack.c.bf16 %v4381_v32, %v4377_v15 }
 0x298   : > { %v2416_v30 = vpop.f32.mrb[62].mxu1  ;;  %v3885_v38 = vadd.f32 %v2800_v44, %v2414_v26  ;;  %v2802_v41 = vpop.f32.mrb[62].mxu0 }
 0x299   : > { %v2418_v25 = vpop.f32.mrb[63].mxu1  ;;  %4390 = vtanh.f32 %v3884_v34  ;;  %v3886_v0 = vadd.f32 %v2802_v41, %v2416_v30  ;;  %v2804_v1 = vpop.f32.mrb[63].mxu0  ;;  %3813 = vmatprep.subr.bf16.mxu1 %v3812_v54 }
 0x29a   : > { %4392 = vtanh.f32 %v3885_v38  ;;  %v3887_v14 = vadd.f32 %v2804_v1, %v2418_v25  ;;  %3815 = vmatpush1.bf16.msra.mxu1 %v3814_v61 }
 0x29b   : > { %v4383_v35 = vpop.eup %4382  ;;  %4394 = vtanh.f32 %v3886_v0 }
 0x29c   : > { %v4385_v40 = vpop.eup %4384  ;;  %4396 = vtanh.f32 %v3887_v14 }
 0x29d   : > { %v4387_v12 = vpop.eup %4386 }
 0x29e   : > { %v4389_v47 = vpop.eup %4388  ;;  %v3818_v48 = vpack.c.bf16 %v4387_v12, %v4383_v35 }
 0x29f   : > { %v3816_v36 = vpack.c.bf16 %v4389_v47, %v4385_v40 }
 0x2a1   : > { %3817 = vmatprep.subr.bf16.mxu1 %v3816_v36 }
 0x2a2   : > { %3819 = vmatpush1.bf16.msra.mxu1 %v3818_v48 }
 0x2a3   : > { %v4391_v42 = vpop.eup %4390 }
 0x2a4   : > { %v4393_v53 = vpop.eup %4392 }
 0x2a5   : > { %v4395_v63 = vpop.eup %4394 }
 0x2a6   : > { %v4397_v18 = vpop.eup %4396  ;;  %v3822_v45 = vpack.c.bf16 %v4395_v63, %v4391_v42 }
 0x2a7   : > { %v3820_v19 = vpack.c.bf16 %v4397_v18, %v4393_v53 }
 0x2a9   : > { %3821 = vmatprep.subr.bf16.mxu1 %v3820_v19 }
 0x2aa   : > { %3823 = vmatpush1.bf16.msra.mxu1 %v3822_v45 }
 0x2ad   : > { %2947 = vmatmul.mubr.f32.vlgmr.msra.gmra.mrb[64].mxu1 %v2875_v20 }
 0x380   : > { %v2948_v5 = vpop.f32.mrb[64].mxu1 }
 0x381   : > { %v2950_v28 = vpop.f32.mrb[65].mxu1 }
 0x382   : > { %v2965_v22 = vcombine.low %v2948_v5, %v2950_v28 }
 0x384   : > { %v2972_v29 = vrot.slane %v2965_v22, %v2971_v13 }
 0x386   : > { %v2979_v31 = vrot.slane %v2972_v29, %v2971_v13 }
 0x388   : > { %v2981_v33 = vadd.f32 %v2979_v31, %v2962_v50 }
 0x38a   : > { %2986 = vst.msk [vmem:[%s215_s30] sm:$0x3] %vm6686_vm11, %v2981_v33 }
 0x391   : > { %v2990_v49 = vld [vmem:[%s215_s30] sm:$0x3] }
 0x392   : > { %v2993_v52 = vmul.f32 %v2992_v46, %v2990_v49 }
 0x394   : > { %2994 = vst.msk [vmem:[%s215_s30] sm:$0x3] %vm6686_vm11, %v2993_v52 }
 0x395   : > { %4423 = shalt.err (!%p4420_p10)
}
 0x396   : > { %s4424_s18 = scalar_lea.hbm %s6700_s14, 32  ;;  %s4428_s26 = scalar_lea.hbm %s6753_s4, 128 }
 0x397   : > { %p4425_p11 = scmp.ne.s32.totalorder %s6700_s14, %s4424_s18  ;;  %p4429_p1 = scmp.lt.u32.totalorder %s6700_s14, %s6753_s4 }
 0x398   : > { %p4430_p2 = scmp.lt.u32.totalorder %s4428_s26, %s4424_s18  ;;  %p4432_p4 = scmp.lt.u32.totalorder %s4424_s18, %s6700_s14 }
 0x399   : > { %p4426_p12 = pnand %p4425_p11, %p4566_p9 }
 0x39a   : > { %p4431_p3 = por %p4430_p2, %p4429_p1 }
 0x39b   : > { %p4427_p0 = pneg %p4426_p12 }
 0x39c   : > { %p4433_p5 = por %p4432_p4, %p4431_p3 }
 0x39e   : > { %p4434_p6 = pnand %p4433_p5, %p4427_p0 }
 0x3a0   : > { %4437 = shalt.err (!%p4434_p6)
}
 0x3a1   : > { %4016 = dma.vmem_to_hbm [thread:$0]  (%p4566_p9), %s6702_s10, 32, %s6700_s14, %s2996_s8  }
 0x3a2 PF: > { %p4022_p7 = scmp.ge.s32.totalorder %s4490_s24, 2  ;;  %s3022_s30 = sand.u32 1, %s4470_s20  }
 0x3a3   : > { %s3023_s7 = scalar_lea.sflag [#allocation5], %s3022_s30 }
 0x3a4   : > { %p4019_p8 = pnand %p4022_p7, %p4573_p13 }
 0x3a6   : > { %4465 = dma.done.wait (!%p4019_p8), %s3023_s7, 32  }
 0x3a7   : > { %4467 = vsyncadd (!%p4019_p8), %s3023_s7, 4294967264  ;;  %s23_s24 = sadd.s32 1, %s4490_s24   ;;  %s7125_s20 = smov %s4474_s21 }
 0x3a8   : > { %p20_p10 = scmp.ge.s32.totalorder %s23_s24, 6   ;;  %s7126_s21 = smov %s4478_s0 }
 0x3a9   : > { %s7127_s0 = smov %s4579_s6  ;;  %s7128_s22 = smov %s4486_s23 }
 0x3aa   : > { %s7129_s23 = smov %s7131_s27  ;;  %22 = sbr.rel (!%p20_p10) target bundleno = 19 (0x13), region = 78 }
 0x3b1   :  { %3028 = vsyncpa [#allocation5], 1 }
 0x3b2   :  { %3030 = vsyncpa [#allocation5 + $0x1], 1 }

</bundles_post_ra>
